<compile_context>
chip_gen: v7x
topology: tpu7x:2x2x1
jax: 0.10.0
libtpu: 0.0.40
codegen_flags: <defaults>
</compile_context>

<pallas_src>
import functools
import math

import jax
import jax.numpy as jnp
from jax.experimental import pallas as pl
from jax.experimental.pallas import tpu as pltpu  # noqa: F401  (TPU backend)

# ----------------------------- model config (small) -----------------------------
VOCAB = 100
MAX_POS = 64
DIM = 32          # hidden size D
N_HEADS = 4
HEAD_DIM = DIM // N_HEADS
FFN_DIM = 64
N_LAYERS = 2
NUM_LABELS = 2
LN_EPS = 1e-12

_PER_LAYER_REFS = 12  # qkv_w, qkv_b, o_w, o_b, sa_ln_g, sa_ln_b, f1_w, f1_b, f2_w, f2_b, ol_g, ol_b


# ------------------------------ in-kernel helpers --------------------------------

def _ln(x, g, b, eps=LN_EPS):
    """LayerNorm over the last (lane) axis; g/b are (1, D) and broadcast over rows."""
    mean = jnp.mean(x, axis=-1, keepdims=True)
    var = jnp.mean(jnp.square(x - mean), axis=-1, keepdims=True)
    return (x - mean) * jax.lax.rsqrt(var + eps) * g + b


def _gelu(x):
    # exact (erf) GELU, matching torch.nn.GELU default used by DistilBERT
    return 0.5 * x * (1.0 + jax.lax.erf(x * (1.0 / math.sqrt(2.0))))


# --------------------------------- fused kernel ----------------------------------

def _fused_forward_kernel(*refs, batch, seq):
    """Entire post-embedding-gather forward in one kernel invocation (no grid).

    refs layout (all in VMEM):
      [hidden, emb_ln_g, emb_ln_b,
       (qkv_w, qkv_b, o_w, o_b, sa_ln_g, sa_ln_b,
        ffn1_w, ffn1_b, ffn2_w, ffn2_b, out_ln_g, out_ln_b) * N_LAYERS,
       pre_w, pre_b, cls_w, cls_b,
       out_ref]
    """
    out_ref = refs[-1]
    it = iter(refs[:-1])
    nxt = lambda: next(it)[...]

    B, S, D, H, Dh = batch, seq, DIM, N_HEADS, HEAD_DIM

    # Embedding LayerNorm, hidden stays [B*S, D] for the whole kernel.
    h = _ln(nxt(), nxt(), nxt())

    for _ in range(N_LAYERS):
        qkv_w, qkv_b = nxt(), nxt()
        o_w, o_b = nxt(), nxt()
        sa_g, sa_b = nxt(), nxt()
        f1_w, f1_b = nxt(), nxt()
        f2_w, f2_b = nxt(), nxt()
        ol_g, ol_b = nxt(), nxt()

        # Fused QKV projection; 1/sqrt(Dh) already folded into the Q columns.
        qkv = jnp.dot(h, qkv_w, preferred_element_type=jnp.float32) + qkv_b  # [B*S, 3D]

        # Per (batch, head) attention, fully unrolled (B*H is tiny); heads are
        # contiguous Dh-lane chunks of the QKV output -> no transposes needed.
        batch_rows = []
        for b in range(B):
            r0 = b * S
            head_ctx = []
            for hh in range(H):
                qh = qkv[r0:r0 + S, 0 * D + hh * Dh: 0 * D + (hh + 1) * Dh]  # [S, Dh]
                kh = qkv[r0:r0 + S, 1 * D + hh * Dh: 1 * D + (hh + 1) * Dh]
                vh = qkv[r0:r0 + S, 2 * D + hh * Dh: 2 * D + (hh + 1) * Dh]
                s = jnp.dot(qh, kh.T, preferred_element_type=jnp.float32)    # [S, S]
                s = s - jnp.max(s, axis=-1, keepdims=True)
                p = jnp.exp(s)
                p = p / jnp.sum(p, axis=-1, keepdims=True)
                head_ctx.append(jnp.dot(p, vh, preferred_element_type=jnp.float32))
            batch_rows.append(jnp.concatenate(head_ctx, axis=-1))            # [S, D]
        ctx = jnp.concatenate(batch_rows, axis=0)                            # [B*S, D]

        # Output projection + fused residual + LayerNorm.
        attn_out = jnp.dot(ctx, o_w, preferred_element_type=jnp.float32) + o_b
        h = _ln(attn_out + h, sa_g, sa_b)

        # Feed-forward (GELU) + fused residual + LayerNorm.
        ff = _gelu(jnp.dot(h, f1_w, preferred_element_type=jnp.float32) + f1_b)
        ff = jnp.dot(ff, f2_w, preferred_element_type=jnp.float32) + f2_b
        h = _ln(ff + h, ol_g, ol_b)

    # Classification head on the CLS token of each sequence (rows b*S).
    pre_w, pre_b, cls_w, cls_b = nxt(), nxt(), nxt(), nxt()
    for b in range(B):
        cls_row = h[b * S: b * S + 1, :]                                     # [1, D]
        pooled = jnp.dot(cls_row, pre_w, preferred_element_type=jnp.float32) + pre_b
        pooled = jnp.maximum(pooled, 0.0)                                    # ReLU
        logits = jnp.dot(pooled, cls_w, preferred_element_type=jnp.float32) + cls_b
        out_ref[b:b + 1, :] = logits.astype(out_ref.dtype)


# --------------------------------- parameter init --------------------------------

def init_params(key):
    def nrm(k, shape, scale=0.02):
        return (scale * jax.random.normal(k, shape)).astype(jnp.float32)

    keys = jax.random.split(key, 8 + N_LAYERS)
    params = {
        "word_emb": nrm(keys[0], (VOCAB, DIM)),
        "pos_emb": nrm(keys[1], (MAX_POS, DIM)),
        "emb_ln_g": jnp.ones((DIM,), jnp.float32),
        "emb_ln_b": jnp.zeros((DIM,), jnp.float32),
        "pre_w": nrm(keys[2], (DIM, DIM)),
        "pre_b": jnp.zeros((DIM,), jnp.float32),
        "cls_w": nrm(keys[3], (DIM, NUM_LABELS)),
        "cls_b": jnp.zeros((NUM_LABELS,), jnp.float32),
        "layers": [],
    }
    for li in range(N_LAYERS):
        lk = jax.random.split(keys[8 + li], 6)
        params["layers"].append({
            "q_w": nrm(lk[0], (DIM, DIM)), "q_b": jnp.zeros((DIM,), jnp.float32),
            "k_w": nrm(lk[1], (DIM, DIM)), "k_b": jnp.zeros((DIM,), jnp.float32),
            "v_w": nrm(lk[2], (DIM, DIM)), "v_b": jnp.zeros((DIM,), jnp.float32),
            "o_w": nrm(lk[3], (DIM, DIM)), "o_b": jnp.zeros((DIM,), jnp.float32),
            "sa_ln_g": jnp.ones((DIM,), jnp.float32),
            "sa_ln_b": jnp.zeros((DIM,), jnp.float32),
            "ffn1_w": nrm(lk[4], (DIM, FFN_DIM)),
            "ffn1_b": jnp.zeros((FFN_DIM,), jnp.float32),
            "ffn2_w": nrm(lk[5], (FFN_DIM, DIM)),
            "ffn2_b": jnp.zeros((DIM,), jnp.float32),
            "out_ln_g": jnp.ones((DIM,), jnp.float32),
            "out_ln_b": jnp.zeros((DIM,), jnp.float32),
        })
    return params


def prepare_params(params):
    """One-time host-side preprocessing (outside jit):
      * concatenate q|k|v weights/biases into a fused (D, 3D) projection,
      * fold the 1/sqrt(Dh) attention scale into the Q columns,
      * reshape all 1-D vectors to lane-shaped (1, N) so the kernel never reshapes.
    """
    scale = 1.0 / math.sqrt(HEAD_DIM)
    row = lambda v: jnp.asarray(v, jnp.float32).reshape(1, -1)

    flat = [row(params["emb_ln_g"]), row(params["emb_ln_b"])]
    for layer in params["layers"]:
        qkv_w = jnp.concatenate(
            [layer["q_w"] * scale, layer["k_w"], layer["v_w"]], axis=1)      # [D, 3D]
        qkv_b = jnp.concatenate(
            [layer["q_b"] * scale, layer["k_b"], layer["v_b"]], axis=0)      # [3D]
        flat += [
            qkv_w, row(qkv_b),
            layer["o_w"], row(layer["o_b"]),
            row(layer["sa_ln_g"]), row(layer["sa_ln_b"]),
            layer["ffn1_w"], row(layer["ffn1_b"]),
            layer["ffn2_w"], row(layer["ffn2_b"]),
            row(layer["out_ln_g"]), row(layer["out_ln_b"]),
        ]
    flat += [params["pre_w"], row(params["pre_b"]),
             params["cls_w"], row(params["cls_b"])]
    assert len(flat) == 2 + _PER_LAYER_REFS * N_LAYERS + 4
    return {"word_emb": params["word_emb"], "pos_emb": params["pos_emb"],
            "flat": tuple(flat)}


# ----------------------------------- forward --------------------------------------

def daddy_forward(prepared, input_ids):
    """DistilBertForSequenceClassification forward -> logits [B, NUM_LABELS]."""
    B, S = input_ids.shape

    # Embedding gather + position add is plain-JAX glue; everything else is one kernel.
    hidden = prepared["word_emb"][input_ids] + prepared["pos_emb"][:S][None, :, :]
    hidden = hidden.reshape(B * S, DIM).astype(jnp.float32)

    kernel = functools.partial(_fused_forward_kernel, batch=B, seq=S)
    logits = pl.pallas_call(
        kernel,
        out_shape=jax.ShapeDtypeStruct((B, NUM_LABELS), jnp.float32),
        # no grid / no BlockSpecs: every operand is loaded whole into VMEM (a few KB),
        # giving a single launch and zero intermediate HBM traffic.
    )(hidden, *prepared["flat"])
    return logits


# ------------------------------------- main ----------------------------------------

if __name__ == "__main__":
    key = jax.random.PRNGKey(0)
    pk, ik = jax.random.split(key)
    params = init_params(pk)
    prepared = prepare_params(params)   # one-time weight fusion / reshaping

    B, S = 2, 8
    input_ids = jax.random.randint(ik, (B, S), 0, VOCAB, dtype=jnp.int32)

    logits = jax.jit(daddy_forward)(prepared, input_ids)
    logits = jax.block_until_ready(logits)

    assert logits.shape == (B, NUM_LABELS)
    assert logits.dtype == jnp.float32
    assert bool(jnp.all(jnp.isfinite(logits)))
    print("KERNEL_OK")
</pallas_src>

<mosaic_0001>
module attributes {stable_mosaic.version = 11 : i64} {
  func.func @_fused_forward_kernel(%arg0: memref<16x32xf32, #tpu.memory_space<vmem>>, %arg1: memref<1x32xf32, #tpu.memory_space<vmem>>, %arg2: memref<1x32xf32, #tpu.memory_space<vmem>>, %arg3: memref<32x96xf32, #tpu.memory_space<vmem>>, %arg4: memref<1x96xf32, #tpu.memory_space<vmem>>, %arg5: memref<32x32xf32, #tpu.memory_space<vmem>>, %arg6: memref<1x32xf32, #tpu.memory_space<vmem>>, %arg7: memref<1x32xf32, #tpu.memory_space<vmem>>, %arg8: memref<1x32xf32, #tpu.memory_space<vmem>>, %arg9: memref<32x64xf32, #tpu.memory_space<vmem>>, %arg10: memref<1x64xf32, #tpu.memory_space<vmem>>, %arg11: memref<64x32xf32, #tpu.memory_space<vmem>>, %arg12: memref<1x32xf32, #tpu.memory_space<vmem>>, %arg13: memref<1x32xf32, #tpu.memory_space<vmem>>, %arg14: memref<1x32xf32, #tpu.memory_space<vmem>>, %arg15: memref<32x96xf32, #tpu.memory_space<vmem>>, %arg16: memref<1x96xf32, #tpu.memory_space<vmem>>, %arg17: memref<32x32xf32, #tpu.memory_space<vmem>>, %arg18: memref<1x32xf32, #tpu.memory_space<vmem>>, %arg19: memref<1x32xf32, #tpu.memory_space<vmem>>, %arg20: memref<1x32xf32, #tpu.memory_space<vmem>>, %arg21: memref<32x64xf32, #tpu.memory_space<vmem>>, %arg22: memref<1x64xf32, #tpu.memory_space<vmem>>, %arg23: memref<64x32xf32, #tpu.memory_space<vmem>>, %arg24: memref<1x32xf32, #tpu.memory_space<vmem>>, %arg25: memref<1x32xf32, #tpu.memory_space<vmem>>, %arg26: memref<1x32xf32, #tpu.memory_space<vmem>>, %arg27: memref<32x32xf32, #tpu.memory_space<vmem>>, %arg28: memref<1x32xf32, #tpu.memory_space<vmem>>, %arg29: memref<32x2xf32, #tpu.memory_space<vmem>>, %arg30: memref<1x2xf32, #tpu.memory_space<vmem>>, %arg31: memref<2x2xf32, #tpu.memory_space<vmem>>) attributes {dimension_semantics = [], scalar_prefetch = 0 : i64, scratch_operands = 0 : i64, tpu.core_type = #tpu.core_type<tc>} {
    %c0 = arith.constant 0 : index
    %c0_0 = arith.constant 0 : index
    %0 = vector.load %arg0[%c0, %c0_0] : memref<16x32xf32, #tpu.memory_space<vmem>>, vector<16x32xf32>
    %c0_1 = arith.constant 0 : index
    %c0_2 = arith.constant 0 : index
    %1 = vector.load %arg1[%c0_1, %c0_2] : memref<1x32xf32, #tpu.memory_space<vmem>>, vector<1x32xf32>
    %c0_3 = arith.constant 0 : index
    %c0_4 = arith.constant 0 : index
    %2 = vector.load %arg2[%c0_3, %c0_4] : memref<1x32xf32, #tpu.memory_space<vmem>>, vector<1x32xf32>
    %cst = arith.constant dense<0.000000e+00> : vector<16xf32>
    %3 = vector.multi_reduction <add>, %0, %cst [1] : vector<16x32xf32> to vector<16xf32>
    %4 = vector.shape_cast %3 : vector<16xf32> to vector<16x1xf32>
    %cst_5 = arith.constant 3.200000e+01 : f32
    %5 = vector.broadcast %cst_5 : f32 to vector<16x1xf32>
    %6 = arith.divf %4, %5 : vector<16x1xf32>
    %7 = vector.broadcast %6 : vector<16x1xf32> to vector<16x32xf32>
    %8 = arith.subf %0, %7 : vector<16x32xf32>
    %9 = arith.mulf %8, %8 : vector<16x32xf32>
    %cst_6 = arith.constant dense<0.000000e+00> : vector<16xf32>
    %10 = vector.multi_reduction <add>, %9, %cst_6 [1] : vector<16x32xf32> to vector<16xf32>
    %11 = vector.shape_cast %10 : vector<16xf32> to vector<16x1xf32>
    %cst_7 = arith.constant 3.200000e+01 : f32
    %12 = vector.broadcast %cst_7 : f32 to vector<16x1xf32>
    %13 = arith.divf %11, %12 : vector<16x1xf32>
    %14 = vector.broadcast %6 : vector<16x1xf32> to vector<16x32xf32>
    %15 = arith.subf %0, %14 : vector<16x32xf32>
    %cst_8 = arith.constant 9.99999996E-13 : f32
    %16 = vector.broadcast %cst_8 : f32 to vector<16x1xf32>
    %17 = arith.addf %13, %16 : vector<16x1xf32>
    %18 = math.rsqrt %17 : vector<16x1xf32>
    %19 = vector.broadcast %18 : vector<16x1xf32> to vector<16x32xf32>
    %20 = arith.mulf %15, %19 : vector<16x32xf32>
    %21 = vector.broadcast %1 : vector<1x32xf32> to vector<16x32xf32>
    %22 = arith.mulf %20, %21 : vector<16x32xf32>
    %23 = vector.broadcast %2 : vector<1x32xf32> to vector<16x32xf32>
    %24 = arith.addf %22, %23 : vector<16x32xf32>
    %c0_9 = arith.constant 0 : index
    %c0_10 = arith.constant 0 : index
    %25 = vector.load %arg3[%c0_9, %c0_10] : memref<32x96xf32, #tpu.memory_space<vmem>>, vector<32x96xf32>
    %c0_11 = arith.constant 0 : index
    %c0_12 = arith.constant 0 : index
    %26 = vector.load %arg4[%c0_11, %c0_12] : memref<1x96xf32, #tpu.memory_space<vmem>>, vector<1x96xf32>
    %c0_13 = arith.constant 0 : index
    %c0_14 = arith.constant 0 : index
    %27 = vector.load %arg5[%c0_13, %c0_14] : memref<32x32xf32, #tpu.memory_space<vmem>>, vector<32x32xf32>
    %c0_15 = arith.constant 0 : index
    %c0_16 = arith.constant 0 : index
    %28 = vector.load %arg6[%c0_15, %c0_16] : memref<1x32xf32, #tpu.memory_space<vmem>>, vector<1x32xf32>
    %c0_17 = arith.constant 0 : index
    %c0_18 = arith.constant 0 : index
    %29 = vector.load %arg7[%c0_17, %c0_18] : memref<1x32xf32, #tpu.memory_space<vmem>>, vector<1x32xf32>
    %c0_19 = arith.constant 0 : index
    %c0_20 = arith.constant 0 : index
    %30 = vector.load %arg8[%c0_19, %c0_20] : memref<1x32xf32, #tpu.memory_space<vmem>>, vector<1x32xf32>
    %c0_21 = arith.constant 0 : index
    %c0_22 = arith.constant 0 : index
    %31 = vector.load %arg9[%c0_21, %c0_22] : memref<32x64xf32, #tpu.memory_space<vmem>>, vector<32x64xf32>
    %c0_23 = arith.constant 0 : index
    %c0_24 = arith.constant 0 : index
    %32 = vector.load %arg10[%c0_23, %c0_24] : memref<1x64xf32, #tpu.memory_space<vmem>>, vector<1x64xf32>
    %c0_25 = arith.constant 0 : index
    %c0_26 = arith.constant 0 : index
    %33 = vector.load %arg11[%c0_25, %c0_26] : memref<64x32xf32, #tpu.memory_space<vmem>>, vector<64x32xf32>
    %c0_27 = arith.constant 0 : index
    %c0_28 = arith.constant 0 : index
    %34 = vector.load %arg12[%c0_27, %c0_28] : memref<1x32xf32, #tpu.memory_space<vmem>>, vector<1x32xf32>
    %c0_29 = arith.constant 0 : index
    %c0_30 = arith.constant 0 : index
    %35 = vector.load %arg13[%c0_29, %c0_30] : memref<1x32xf32, #tpu.memory_space<vmem>>, vector<1x32xf32>
    %c0_31 = arith.constant 0 : index
    %c0_32 = arith.constant 0 : index
    %36 = vector.load %arg14[%c0_31, %c0_32] : memref<1x32xf32, #tpu.memory_space<vmem>>, vector<1x32xf32>
    %cst_33 = arith.constant dense<0.000000e+00> : vector<16x96xf32>
    %37 = tpu.matmul %24, %25, %cst_33 {dimension_numbers = #tpu.dot_dimension_numbers<[1], [0], [0], [1], [0, 0, 1, 1], [], []>} : vector<16x32xf32>, vector<32x96xf32>, vector<16x96xf32> -> vector<16x96xf32>
    %38 = vector.broadcast %26 : vector<1x96xf32> to vector<16x96xf32>
    %39 = arith.addf %37, %38 : vector<16x96xf32>
    %40 = vector.extract_strided_slice %39 {offsets = [0, 0], sizes = [8, 8], strides = [1, 1]} : vector<16x96xf32> to vector<8x8xf32>
    %41 = vector.extract_strided_slice %39 {offsets = [0, 32], sizes = [8, 8], strides = [1, 1]} : vector<16x96xf32> to vector<8x8xf32>
    %42 = vector.extract_strided_slice %39 {offsets = [0, 64], sizes = [8, 8], strides = [1, 1]} : vector<16x96xf32> to vector<8x8xf32>
    %43 = tpu.transpose %41, [1, 0] : vector<8x8xf32> -> vector<8x8xf32>
    %cst_34 = arith.constant dense<0.000000e+00> : vector<8x8xf32>
    %44 = tpu.matmul %40, %43, %cst_34 {dimension_numbers = #tpu.dot_dimension_numbers<[1], [0], [0], [1], [0, 0, 1, 1], [], []>} : vector<8x8xf32>, vector<8x8xf32>, vector<8x8xf32> -> vector<8x8xf32>
    %cst_35 = arith.constant dense<0xFF800000> : vector<8xf32>
    %45 = vector.multi_reduction <maximumf>, %44, %cst_35 [1] : vector<8x8xf32> to vector<8xf32>
    %46 = vector.shape_cast %45 : vector<8xf32> to vector<8x1xf32>
    %47 = vector.broadcast %46 : vector<8x1xf32> to vector<8x8xf32>
    %48 = arith.subf %44, %47 : vector<8x8xf32>
    %49 = math.exp %48 : vector<8x8xf32>
    %cst_36 = arith.constant dense<0.000000e+00> : vector<8xf32>
    %50 = vector.multi_reduction <add>, %49, %cst_36 [1] : vector<8x8xf32> to vector<8xf32>
    %51 = vector.shape_cast %50 : vector<8xf32> to vector<8x1xf32>
    %52 = vector.broadcast %51 : vector<8x1xf32> to vector<8x8xf32>
    %53 = arith.divf %49, %52 : vector<8x8xf32>
    %cst_37 = arith.constant dense<0.000000e+00> : vector<8x8xf32>
    %54 = tpu.matmul %53, %42, %cst_37 {dimension_numbers = #tpu.dot_dimension_numbers<[1], [0], [0], [1], [0, 0, 1, 1], [], []>} : vector<8x8xf32>, vector<8x8xf32>, vector<8x8xf32> -> vector<8x8xf32>
    %55 = vector.extract_strided_slice %39 {offsets = [0, 8], sizes = [8, 8], strides = [1, 1]} : vector<16x96xf32> to vector<8x8xf32>
    %56 = vector.extract_strided_slice %39 {offsets = [0, 40], sizes = [8, 8], strides = [1, 1]} : vector<16x96xf32> to vector<8x8xf32>
    %57 = vector.extract_strided_slice %39 {offsets = [0, 72], sizes = [8, 8], strides = [1, 1]} : vector<16x96xf32> to vector<8x8xf32>
    %58 = tpu.transpose %56, [1, 0] : vector<8x8xf32> -> vector<8x8xf32>
    %cst_38 = arith.constant dense<0.000000e+00> : vector<8x8xf32>
    %59 = tpu.matmul %55, %58, %cst_38 {dimension_numbers = #tpu.dot_dimension_numbers<[1], [0], [0], [1], [0, 0, 1, 1], [], []>} : vector<8x8xf32>, vector<8x8xf32>, vector<8x8xf32> -> vector<8x8xf32>
    %cst_39 = arith.constant dense<0xFF800000> : vector<8xf32>
    %60 = vector.multi_reduction <maximumf>, %59, %cst_39 [1] : vector<8x8xf32> to vector<8xf32>
    %61 = vector.shape_cast %60 : vector<8xf32> to vector<8x1xf32>
    %62 = vector.broadcast %61 : vector<8x1xf32> to vector<8x8xf32>
    %63 = arith.subf %59, %62 : vector<8x8xf32>
    %64 = math.exp %63 : vector<8x8xf32>
    %cst_40 = arith.constant dense<0.000000e+00> : vector<8xf32>
    %65 = vector.multi_reduction <add>, %64, %cst_40 [1] : vector<8x8xf32> to vector<8xf32>
    %66 = vector.shape_cast %65 : vector<8xf32> to vector<8x1xf32>
    %67 = vector.broadcast %66 : vector<8x1xf32> to vector<8x8xf32>
    %68 = arith.divf %64, %67 : vector<8x8xf32>
    %cst_41 = arith.constant dense<0.000000e+00> : vector<8x8xf32>
    %69 = tpu.matmul %68, %57, %cst_41 {dimension_numbers = #tpu.dot_dimension_numbers<[1], [0], [0], [1], [0, 0, 1, 1], [], []>} : vector<8x8xf32>, vector<8x8xf32>, vector<8x8xf32> -> vector<8x8xf32>
    %70 = vector.extract_strided_slice %39 {offsets = [0, 16], sizes = [8, 8], strides = [1, 1]} : vector<16x96xf32> to vector<8x8xf32>
    %71 = vector.extract_strided_slice %39 {offsets = [0, 48], sizes = [8, 8], strides = [1, 1]} : vector<16x96xf32> to vector<8x8xf32>
    %72 = vector.extract_strided_slice %39 {offsets = [0, 80], sizes = [8, 8], strides = [1, 1]} : vector<16x96xf32> to vector<8x8xf32>
    %73 = tpu.transpose %71, [1, 0] : vector<8x8xf32> -> vector<8x8xf32>
    %cst_42 = arith.constant dense<0.000000e+00> : vector<8x8xf32>
    %74 = tpu.matmul %70, %73, %cst_42 {dimension_numbers = #tpu.dot_dimension_numbers<[1], [0], [0], [1], [0, 0, 1, 1], [], []>} : vector<8x8xf32>, vector<8x8xf32>, vector<8x8xf32> -> vector<8x8xf32>
    %cst_43 = arith.constant dense<0xFF800000> : vector<8xf32>
    %75 = vector.multi_reduction <maximumf>, %74, %cst_43 [1] : vector<8x8xf32> to vector<8xf32>
    %76 = vector.shape_cast %75 : vector<8xf32> to vector<8x1xf32>
    %77 = vector.broadcast %76 : vector<8x1xf32> to vector<8x8xf32>
    %78 = arith.subf %74, %77 : vector<8x8xf32>
    %79 = math.exp %78 : vector<8x8xf32>
    %cst_44 = arith.constant dense<0.000000e+00> : vector<8xf32>
    %80 = vector.multi_reduction <add>, %79, %cst_44 [1] : vector<8x8xf32> to vector<8xf32>
    %81 = vector.shape_cast %80 : vector<8xf32> to vector<8x1xf32>
    %82 = vector.broadcast %81 : vector<8x1xf32> to vector<8x8xf32>
    %83 = arith.divf %79, %82 : vector<8x8xf32>
    %cst_45 = arith.constant dense<0.000000e+00> : vector<8x8xf32>
    %84 = tpu.matmul %83, %72, %cst_45 {dimension_numbers = #tpu.dot_dimension_numbers<[1], [0], [0], [1], [0, 0, 1, 1], [], []>} : vector<8x8xf32>, vector<8x8xf32>, vector<8x8xf32> -> vector<8x8xf32>
    %85 = vector.extract_strided_slice %39 {offsets = [0, 24], sizes = [8, 8], strides = [1, 1]} : vector<16x96xf32> to vector<8x8xf32>
    %86 = vector.extract_strided_slice %39 {offsets = [0, 56], sizes = [8, 8], strides = [1, 1]} : vector<16x96xf32> to vector<8x8xf32>
    %87 = vector.extract_strided_slice %39 {offsets = [0, 88], sizes = [8, 8], strides = [1, 1]} : vector<16x96xf32> to vector<8x8xf32>
    %88 = tpu.transpose %86, [1, 0] : vector<8x8xf32> -> vector<8x8xf32>
    %cst_46 = arith.constant dense<0.000000e+00> : vector<8x8xf32>
    %89 = tpu.matmul %85, %88, %cst_46 {dimension_numbers = #tpu.dot_dimension_numbers<[1], [0], [0], [1], [0, 0, 1, 1], [], []>} : vector<8x8xf32>, vector<8x8xf32>, vector<8x8xf32> -> vector<8x8xf32>
    %cst_47 = arith.constant dense<0xFF800000> : vector<8xf32>
    %90 = vector.multi_reduction <maximumf>, %89, %cst_47 [1] : vector<8x8xf32> to vector<8xf32>
    %91 = vector.shape_cast %90 : vector<8xf32> to vector<8x1xf32>
    %92 = vector.broadcast %91 : vector<8x1xf32> to vector<8x8xf32>
    %93 = arith.subf %89, %92 : vector<8x8xf32>
    %94 = math.exp %93 : vector<8x8xf32>
    %cst_48 = arith.constant dense<0.000000e+00> : vector<8xf32>
    %95 = vector.multi_reduction <add>, %94, %cst_48 [1] : vector<8x8xf32> to vector<8xf32>
    %96 = vector.shape_cast %95 : vector<8xf32> to vector<8x1xf32>
    %97 = vector.broadcast %96 : vector<8x1xf32> to vector<8x8xf32>
    %98 = arith.divf %94, %97 : vector<8x8xf32>
    %cst_49 = arith.constant dense<0.000000e+00> : vector<8x8xf32>
    %99 = tpu.matmul %98, %87, %cst_49 {dimension_numbers = #tpu.dot_dimension_numbers<[1], [0], [0], [1], [0, 0, 1, 1], [], []>} : vector<8x8xf32>, vector<8x8xf32>, vector<8x8xf32> -> vector<8x8xf32>
    %100 = tpu.concatenate %54, %69, %84, %99 in 1 : vector<8x8xf32>, vector<8x8xf32>, vector<8x8xf32>, vector<8x8xf32> -> vector<8x32xf32>
    %101 = vector.extract_strided_slice %39 {offsets = [8, 0], sizes = [8, 8], strides = [1, 1]} : vector<16x96xf32> to vector<8x8xf32>
    %102 = vector.extract_strided_slice %39 {offsets = [8, 32], sizes = [8, 8], strides = [1, 1]} : vector<16x96xf32> to vector<8x8xf32>
    %103 = vector.extract_strided_slice %39 {offsets = [8, 64], sizes = [8, 8], strides = [1, 1]} : vector<16x96xf32> to vector<8x8xf32>
    %104 = tpu.transpose %102, [1, 0] : vector<8x8xf32> -> vector<8x8xf32>
    %cst_50 = arith.constant dense<0.000000e+00> : vector<8x8xf32>
    %105 = tpu.matmul %101, %104, %cst_50 {dimension_numbers = #tpu.dot_dimension_numbers<[1], [0], [0], [1], [0, 0, 1, 1], [], []>} : vector<8x8xf32>, vector<8x8xf32>, vector<8x8xf32> -> vector<8x8xf32>
    %cst_51 = arith.constant dense<0xFF800000> : vector<8xf32>
    %106 = vector.multi_reduction <maximumf>, %105, %cst_51 [1] : vector<8x8xf32> to vector<8xf32>
    %107 = vector.shape_cast %106 : vector<8xf32> to vector<8x1xf32>
    %108 = vector.broadcast %107 : vector<8x1xf32> to vector<8x8xf32>
    %109 = arith.subf %105, %108 : vector<8x8xf32>
    %110 = math.exp %109 : vector<8x8xf32>
    %cst_52 = arith.constant dense<0.000000e+00> : vector<8xf32>
    %111 = vector.multi_reduction <add>, %110, %cst_52 [1] : vector<8x8xf32> to vector<8xf32>
    %112 = vector.shape_cast %111 : vector<8xf32> to vector<8x1xf32>
    %113 = vector.broadcast %112 : vector<8x1xf32> to vector<8x8xf32>
    %114 = arith.divf %110, %113 : vector<8x8xf32>
    %cst_53 = arith.constant dense<0.000000e+00> : vector<8x8xf32>
    %115 = tpu.matmul %114, %103, %cst_53 {dimension_numbers = #tpu.dot_dimension_numbers<[1], [0], [0], [1], [0, 0, 1, 1], [], []>} : vector<8x8xf32>, vector<8x8xf32>, vector<8x8xf32> -> vector<8x8xf32>
    %116 = vector.extract_strided_slice %39 {offsets = [8, 8], sizes = [8, 8], strides = [1, 1]} : vector<16x96xf32> to vector<8x8xf32>
    %117 = vector.extract_strided_slice %39 {offsets = [8, 40], sizes = [8, 8], strides = [1, 1]} : vector<16x96xf32> to vector<8x8xf32>
    %118 = vector.extract_strided_slice %39 {offsets = [8, 72], sizes = [8, 8], strides = [1, 1]} : vector<16x96xf32> to vector<8x8xf32>
    %119 = tpu.transpose %117, [1, 0] : vector<8x8xf32> -> vector<8x8xf32>
    %cst_54 = arith.constant dense<0.000000e+00> : vector<8x8xf32>
    %120 = tpu.matmul %116, %119, %cst_54 {dimension_numbers = #tpu.dot_dimension_numbers<[1], [0], [0], [1], [0, 0, 1, 1], [], []>} : vector<8x8xf32>, vector<8x8xf32>, vector<8x8xf32> -> vector<8x8xf32>
    %cst_55 = arith.constant dense<0xFF800000> : vector<8xf32>
    %121 = vector.multi_reduction <maximumf>, %120, %cst_55 [1] : vector<8x8xf32> to vector<8xf32>
    %122 = vector.shape_cast %121 : vector<8xf32> to vector<8x1xf32>
    %123 = vector.broadcast %122 : vector<8x1xf32> to vector<8x8xf32>
    %124 = arith.subf %120, %123 : vector<8x8xf32>
    %125 = math.exp %124 : vector<8x8xf32>
    %cst_56 = arith.constant dense<0.000000e+00> : vector<8xf32>
    %126 = vector.multi_reduction <add>, %125, %cst_56 [1] : vector<8x8xf32> to vector<8xf32>
    %127 = vector.shape_cast %126 : vector<8xf32> to vector<8x1xf32>
    %128 = vector.broadcast %127 : vector<8x1xf32> to vector<8x8xf32>
    %129 = arith.divf %125, %128 : vector<8x8xf32>
    %cst_57 = arith.constant dense<0.000000e+00> : vector<8x8xf32>
    %130 = tpu.matmul %129, %118, %cst_57 {dimension_numbers = #tpu.dot_dimension_numbers<[1], [0], [0], [1], [0, 0, 1, 1], [], []>} : vector<8x8xf32>, vector<8x8xf32>, vector<8x8xf32> -> vector<8x8xf32>
    %131 = vector.extract_strided_slice %39 {offsets = [8, 16], sizes = [8, 8], strides = [1, 1]} : vector<16x96xf32> to vector<8x8xf32>
    %132 = vector.extract_strided_slice %39 {offsets = [8, 48], sizes = [8, 8], strides = [1, 1]} : vector<16x96xf32> to vector<8x8xf32>
    %133 = vector.extract_strided_slice %39 {offsets = [8, 80], sizes = [8, 8], strides = [1, 1]} : vector<16x96xf32> to vector<8x8xf32>
    %134 = tpu.transpose %132, [1, 0] : vector<8x8xf32> -> vector<8x8xf32>
    %cst_58 = arith.constant dense<0.000000e+00> : vector<8x8xf32>
    %135 = tpu.matmul %131, %134, %cst_58 {dimension_numbers = #tpu.dot_dimension_numbers<[1], [0], [0], [1], [0, 0, 1, 1], [], []>} : vector<8x8xf32>, vector<8x8xf32>, vector<8x8xf32> -> vector<8x8xf32>
    %cst_59 = arith.constant dense<0xFF800000> : vector<8xf32>
    %136 = vector.multi_reduction <maximumf>, %135, %cst_59 [1] : vector<8x8xf32> to vector<8xf32>
    %137 = vector.shape_cast %136 : vector<8xf32> to vector<8x1xf32>
    %138 = vector.broadcast %137 : vector<8x1xf32> to vector<8x8xf32>
    %139 = arith.subf %135, %138 : vector<8x8xf32>
    %140 = math.exp %139 : vector<8x8xf32>
    %cst_60 = arith.constant dense<0.000000e+00> : vector<8xf32>
    %141 = vector.multi_reduction <add>, %140, %cst_60 [1] : vector<8x8xf32> to vector<8xf32>
    %142 = vector.shape_cast %141 : vector<8xf32> to vector<8x1xf32>
    %143 = vector.broadcast %142 : vector<8x1xf32> to vector<8x8xf32>
    %144 = arith.divf %140, %143 : vector<8x8xf32>
    %cst_61 = arith.constant dense<0.000000e+00> : vector<8x8xf32>
    %145 = tpu.matmul %144, %133, %cst_61 {dimension_numbers = #tpu.dot_dimension_numbers<[1], [0], [0], [1], [0, 0, 1, 1], [], []>} : vector<8x8xf32>, vector<8x8xf32>, vector<8x8xf32> -> vector<8x8xf32>
    %146 = vector.extract_strided_slice %39 {offsets = [8, 24], sizes = [8, 8], strides = [1, 1]} : vector<16x96xf32> to vector<8x8xf32>
    %147 = vector.extract_strided_slice %39 {offsets = [8, 56], sizes = [8, 8], strides = [1, 1]} : vector<16x96xf32> to vector<8x8xf32>
    %148 = vector.extract_strided_slice %39 {offsets = [8, 88], sizes = [8, 8], strides = [1, 1]} : vector<16x96xf32> to vector<8x8xf32>
    %149 = tpu.transpose %147, [1, 0] : vector<8x8xf32> -> vector<8x8xf32>
    %cst_62 = arith.constant dense<0.000000e+00> : vector<8x8xf32>
    %150 = tpu.matmul %146, %149, %cst_62 {dimension_numbers = #tpu.dot_dimension_numbers<[1], [0], [0], [1], [0, 0, 1, 1], [], []>} : vector<8x8xf32>, vector<8x8xf32>, vector<8x8xf32> -> vector<8x8xf32>
    %cst_63 = arith.constant dense<0xFF800000> : vector<8xf32>
    %151 = vector.multi_reduction <maximumf>, %150, %cst_63 [1] : vector<8x8xf32> to vector<8xf32>
    %152 = vector.shape_cast %151 : vector<8xf32> to vector<8x1xf32>
    %153 = vector.broadcast %152 : vector<8x1xf32> to vector<8x8xf32>
    %154 = arith.subf %150, %153 : vector<8x8xf32>
    %155 = math.exp %154 : vector<8x8xf32>
    %cst_64 = arith.constant dense<0.000000e+00> : vector<8xf32>
    %156 = vector.multi_reduction <add>, %155, %cst_64 [1] : vector<8x8xf32> to vector<8xf32>
    %157 = vector.shape_cast %156 : vector<8xf32> to vector<8x1xf32>
    %158 = vector.broadcast %157 : vector<8x1xf32> to vector<8x8xf32>
    %159 = arith.divf %155, %158 : vector<8x8xf32>
    %cst_65 = arith.constant dense<0.000000e+00> : vector<8x8xf32>
    %160 = tpu.matmul %159, %148, %cst_65 {dimension_numbers = #tpu.dot_dimension_numbers<[1], [0], [0], [1], [0, 0, 1, 1], [], []>} : vector<8x8xf32>, vector<8x8xf32>, vector<8x8xf32> -> vector<8x8xf32>
    %161 = tpu.concatenate %115, %130, %145, %160 in 1 : vector<8x8xf32>, vector<8x8xf32>, vector<8x8xf32>, vector<8x8xf32> -> vector<8x32xf32>
    %162 = tpu.concatenate %100, %161 in 0 : vector<8x32xf32>, vector<8x32xf32> -> vector<16x32xf32>
    %cst_66 = arith.constant dense<0.000000e+00> : vector<16x32xf32>
    %163 = tpu.matmul %162, %27, %cst_66 {dimension_numbers = #tpu.dot_dimension_numbers<[1], [0], [0], [1], [0, 0, 1, 1], [], []>} : vector<16x32xf32>, vector<32x32xf32>, vector<16x32xf32> -> vector<16x32xf32>
    %164 = vector.broadcast %28 : vector<1x32xf32> to vector<16x32xf32>
    %165 = arith.addf %163, %164 : vector<16x32xf32>
    %166 = arith.addf %165, %24 : vector<16x32xf32>
    %cst_67 = arith.constant dense<0.000000e+00> : vector<16xf32>
    %167 = vector.multi_reduction <add>, %166, %cst_67 [1] : vector<16x32xf32> to vector<16xf32>
    %168 = vector.shape_cast %167 : vector<16xf32> to vector<16x1xf32>
    %cst_68 = arith.constant 3.200000e+01 : f32
    %169 = vector.broadcast %cst_68 : f32 to vector<16x1xf32>
    %170 = arith.divf %168, %169 : vector<16x1xf32>
    %171 = vector.broadcast %170 : vector<16x1xf32> to vector<16x32xf32>
    %172 = arith.subf %166, %171 : vector<16x32xf32>
    %173 = arith.mulf %172, %172 : vector<16x32xf32>
    %cst_69 = arith.constant dense<0.000000e+00> : vector<16xf32>
    %174 = vector.multi_reduction <add>, %173, %cst_69 [1] : vector<16x32xf32> to vector<16xf32>
    %175 = vector.shape_cast %174 : vector<16xf32> to vector<16x1xf32>
    %cst_70 = arith.constant 3.200000e+01 : f32
    %176 = vector.broadcast %cst_70 : f32 to vector<16x1xf32>
    %177 = arith.divf %175, %176 : vector<16x1xf32>
    %178 = vector.broadcast %170 : vector<16x1xf32> to vector<16x32xf32>
    %179 = arith.subf %166, %178 : vector<16x32xf32>
    %cst_71 = arith.constant 9.99999996E-13 : f32
    %180 = vector.broadcast %cst_71 : f32 to vector<16x1xf32>
    %181 = arith.addf %177, %180 : vector<16x1xf32>
    %182 = math.rsqrt %181 : vector<16x1xf32>
    %183 = vector.broadcast %182 : vector<16x1xf32> to vector<16x32xf32>
    %184 = arith.mulf %179, %183 : vector<16x32xf32>
    %185 = vector.broadcast %29 : vector<1x32xf32> to vector<16x32xf32>
    %186 = arith.mulf %184, %185 : vector<16x32xf32>
    %187 = vector.broadcast %30 : vector<1x32xf32> to vector<16x32xf32>
    %188 = arith.addf %186, %187 : vector<16x32xf32>
    %cst_72 = arith.constant dense<0.000000e+00> : vector<16x64xf32>
    %189 = tpu.matmul %188, %31, %cst_72 {dimension_numbers = #tpu.dot_dimension_numbers<[1], [0], [0], [1], [0, 0, 1, 1], [], []>} : vector<16x32xf32>, vector<32x64xf32>, vector<16x64xf32> -> vector<16x64xf32>
    %190 = vector.broadcast %32 : vector<1x64xf32> to vector<16x64xf32>
    %191 = arith.addf %189, %190 : vector<16x64xf32>
    %cst_73 = arith.constant 5.000000e-01 : f32
    %192 = vector.broadcast %cst_73 : f32 to vector<16x64xf32>
    %193 = arith.mulf %192, %191 : vector<16x64xf32>
    %cst_74 = arith.constant 0.707106769 : f32
    %194 = vector.broadcast %cst_74 : f32 to vector<16x64xf32>
    %195 = arith.mulf %191, %194 : vector<16x64xf32>
    %196 = math.erf %195 : vector<16x64xf32>
    %cst_75 = arith.constant 1.000000e+00 : f32
    %197 = vector.broadcast %cst_75 : f32 to vector<16x64xf32>
    %198 = arith.addf %197, %196 : vector<16x64xf32>
    %199 = arith.mulf %193, %198 : vector<16x64xf32>
    %cst_76 = arith.constant dense<0.000000e+00> : vector<16x32xf32>
    %200 = tpu.matmul %199, %33, %cst_76 {dimension_numbers = #tpu.dot_dimension_numbers<[1], [0], [0], [1], [0, 0, 1, 1], [], []>} : vector<16x64xf32>, vector<64x32xf32>, vector<16x32xf32> -> vector<16x32xf32>
    %201 = vector.broadcast %34 : vector<1x32xf32> to vector<16x32xf32>
    %202 = arith.addf %200, %201 : vector<16x32xf32>
    %203 = arith.addf %202, %188 : vector<16x32xf32>
    %cst_77 = arith.constant dense<0.000000e+00> : vector<16xf32>
    %204 = vector.multi_reduction <add>, %203, %cst_77 [1] : vector<16x32xf32> to vector<16xf32>
    %205 = vector.shape_cast %204 : vector<16xf32> to vector<16x1xf32>
    %cst_78 = arith.constant 3.200000e+01 : f32
    %206 = vector.broadcast %cst_78 : f32 to vector<16x1xf32>
    %207 = arith.divf %205, %206 : vector<16x1xf32>
    %208 = vector.broadcast %207 : vector<16x1xf32> to vector<16x32xf32>
    %209 = arith.subf %203, %208 : vector<16x32xf32>
    %210 = arith.mulf %209, %209 : vector<16x32xf32>
    %cst_79 = arith.constant dense<0.000000e+00> : vector<16xf32>
    %211 = vector.multi_reduction <add>, %210, %cst_79 [1] : vector<16x32xf32> to vector<16xf32>
    %212 = vector.shape_cast %211 : vector<16xf32> to vector<16x1xf32>
    %cst_80 = arith.constant 3.200000e+01 : f32
    %213 = vector.broadcast %cst_80 : f32 to vector<16x1xf32>
    %214 = arith.divf %212, %213 : vector<16x1xf32>
    %215 = vector.broadcast %207 : vector<16x1xf32> to vector<16x32xf32>
    %216 = arith.subf %203, %215 : vector<16x32xf32>
    %cst_81 = arith.constant 9.99999996E-13 : f32
    %217 = vector.broadcast %cst_81 : f32 to vector<16x1xf32>
    %218 = arith.addf %214, %217 : vector<16x1xf32>
    %219 = math.rsqrt %218 : vector<16x1xf32>
    %220 = vector.broadcast %219 : vector<16x1xf32> to vector<16x32xf32>
    %221 = arith.mulf %216, %220 : vector<16x32xf32>
    %222 = vector.broadcast %35 : vector<1x32xf32> to vector<16x32xf32>
    %223 = arith.mulf %221, %222 : vector<16x32xf32>
    %224 = vector.broadcast %36 : vector<1x32xf32> to vector<16x32xf32>
    %225 = arith.addf %223, %224 : vector<16x32xf32>
    %c0_82 = arith.constant 0 : index
    %c0_83 = arith.constant 0 : index
    %226 = vector.load %arg15[%c0_82, %c0_83] : memref<32x96xf32, #tpu.memory_space<vmem>>, vector<32x96xf32>
    %c0_84 = arith.constant 0 : index
    %c0_85 = arith.constant 0 : index
    %227 = vector.load %arg16[%c0_84, %c0_85] : memref<1x96xf32, #tpu.memory_space<vmem>>, vector<1x96xf32>
    %c0_86 = arith.constant 0 : index
    %c0_87 = arith.constant 0 : index
    %228 = vector.load %arg17[%c0_86, %c0_87] : memref<32x32xf32, #tpu.memory_space<vmem>>, vector<32x32xf32>
    %c0_88 = arith.constant 0 : index
    %c0_89 = arith.constant 0 : index
    %229 = vector.load %arg18[%c0_88, %c0_89] : memref<1x32xf32, #tpu.memory_space<vmem>>, vector<1x32xf32>
    %c0_90 = arith.constant 0 : index
    %c0_91 = arith.constant 0 : index
    %230 = vector.load %arg19[%c0_90, %c0_91] : memref<1x32xf32, #tpu.memory_space<vmem>>, vector<1x32xf32>
    %c0_92 = arith.constant 0 : index
    %c0_93 = arith.constant 0 : index
    %231 = vector.load %arg20[%c0_92, %c0_93] : memref<1x32xf32, #tpu.memory_space<vmem>>, vector<1x32xf32>
    %c0_94 = arith.constant 0 : index
    %c0_95 = arith.constant 0 : index
    %232 = vector.load %arg21[%c0_94, %c0_95] : memref<32x64xf32, #tpu.memory_space<vmem>>, vector<32x64xf32>
    %c0_96 = arith.constant 0 : index
    %c0_97 = arith.constant 0 : index
    %233 = vector.load %arg22[%c0_96, %c0_97] : memref<1x64xf32, #tpu.memory_space<vmem>>, vector<1x64xf32>
    %c0_98 = arith.constant 0 : index
    %c0_99 = arith.constant 0 : index
    %234 = vector.load %arg23[%c0_98, %c0_99] : memref<64x32xf32, #tpu.memory_space<vmem>>, vector<64x32xf32>
    %c0_100 = arith.constant 0 : index
    %c0_101 = arith.constant 0 : index
    %235 = vector.load %arg24[%c0_100, %c0_101] : memref<1x32xf32, #tpu.memory_space<vmem>>, vector<1x32xf32>
    %c0_102 = arith.constant 0 : index
    %c0_103 = arith.constant 0 : index
    %236 = vector.load %arg25[%c0_102, %c0_103] : memref<1x32xf32, #tpu.memory_space<vmem>>, vector<1x32xf32>
    %c0_104 = arith.constant 0 : index
    %c0_105 = arith.constant 0 : index
    %237 = vector.load %arg26[%c0_104, %c0_105] : memref<1x32xf32, #tpu.memory_space<vmem>>, vector<1x32xf32>
    %cst_106 = arith.constant dense<0.000000e+00> : vector<16x96xf32>
    %238 = tpu.matmul %225, %226, %cst_106 {dimension_numbers = #tpu.dot_dimension_numbers<[1], [0], [0], [1], [0, 0, 1, 1], [], []>} : vector<16x32xf32>, vector<32x96xf32>, vector<16x96xf32> -> vector<16x96xf32>
    %239 = vector.broadcast %227 : vector<1x96xf32> to vector<16x96xf32>
    %240 = arith.addf %238, %239 : vector<16x96xf32>
    %241 = vector.extract_strided_slice %240 {offsets = [0, 0], sizes = [8, 8], strides = [1, 1]} : vector<16x96xf32> to vector<8x8xf32>
    %242 = vector.extract_strided_slice %240 {offsets = [0, 32], sizes = [8, 8], strides = [1, 1]} : vector<16x96xf32> to vector<8x8xf32>
    %243 = vector.extract_strided_slice %240 {offsets = [0, 64], sizes = [8, 8], strides = [1, 1]} : vector<16x96xf32> to vector<8x8xf32>
    %244 = tpu.transpose %242, [1, 0] : vector<8x8xf32> -> vector<8x8xf32>
    %cst_107 = arith.constant dense<0.000000e+00> : vector<8x8xf32>
    %245 = tpu.matmul %241, %244, %cst_107 {dimension_numbers = #tpu.dot_dimension_numbers<[1], [0], [0], [1], [0, 0, 1, 1], [], []>} : vector<8x8xf32>, vector<8x8xf32>, vector<8x8xf32> -> vector<8x8xf32>
    %cst_108 = arith.constant dense<0xFF800000> : vector<8xf32>
    %246 = vector.multi_reduction <maximumf>, %245, %cst_108 [1] : vector<8x8xf32> to vector<8xf32>
    %247 = vector.shape_cast %246 : vector<8xf32> to vector<8x1xf32>
    %248 = vector.broadcast %247 : vector<8x1xf32> to vector<8x8xf32>
    %249 = arith.subf %245, %248 : vector<8x8xf32>
    %250 = math.exp %249 : vector<8x8xf32>
    %cst_109 = arith.constant dense<0.000000e+00> : vector<8xf32>
    %251 = vector.multi_reduction <add>, %250, %cst_109 [1] : vector<8x8xf32> to vector<8xf32>
    %252 = vector.shape_cast %251 : vector<8xf32> to vector<8x1xf32>
    %253 = vector.broadcast %252 : vector<8x1xf32> to vector<8x8xf32>
    %254 = arith.divf %250, %253 : vector<8x8xf32>
    %cst_110 = arith.constant dense<0.000000e+00> : vector<8x8xf32>
    %255 = tpu.matmul %254, %243, %cst_110 {dimension_numbers = #tpu.dot_dimension_numbers<[1], [0], [0], [1], [0, 0, 1, 1], [], []>} : vector<8x8xf32>, vector<8x8xf32>, vector<8x8xf32> -> vector<8x8xf32>
    %256 = vector.extract_strided_slice %240 {offsets = [0, 8], sizes = [8, 8], strides = [1, 1]} : vector<16x96xf32> to vector<8x8xf32>
    %257 = vector.extract_strided_slice %240 {offsets = [0, 40], sizes = [8, 8], strides = [1, 1]} : vector<16x96xf32> to vector<8x8xf32>
    %258 = vector.extract_strided_slice %240 {offsets = [0, 72], sizes = [8, 8], strides = [1, 1]} : vector<16x96xf32> to vector<8x8xf32>
    %259 = tpu.transpose %257, [1, 0] : vector<8x8xf32> -> vector<8x8xf32>
    %cst_111 = arith.constant dense<0.000000e+00> : vector<8x8xf32>
    %260 = tpu.matmul %256, %259, %cst_111 {dimension_numbers = #tpu.dot_dimension_numbers<[1], [0], [0], [1], [0, 0, 1, 1], [], []>} : vector<8x8xf32>, vector<8x8xf32>, vector<8x8xf32> -> vector<8x8xf32>
    %cst_112 = arith.constant dense<0xFF800000> : vector<8xf32>
    %261 = vector.multi_reduction <maximumf>, %260, %cst_112 [1] : vector<8x8xf32> to vector<8xf32>
    %262 = vector.shape_cast %261 : vector<8xf32> to vector<8x1xf32>
    %263 = vector.broadcast %262 : vector<8x1xf32> to vector<8x8xf32>
    %264 = arith.subf %260, %263 : vector<8x8xf32>
    %265 = math.exp %264 : vector<8x8xf32>
    %cst_113 = arith.constant dense<0.000000e+00> : vector<8xf32>
    %266 = vector.multi_reduction <add>, %265, %cst_113 [1] : vector<8x8xf32> to vector<8xf32>
    %267 = vector.shape_cast %266 : vector<8xf32> to vector<8x1xf32>
    %268 = vector.broadcast %267 : vector<8x1xf32> to vector<8x8xf32>
    %269 = arith.divf %265, %268 : vector<8x8xf32>
    %cst_114 = arith.constant dense<0.000000e+00> : vector<8x8xf32>
    %270 = tpu.matmul %269, %258, %cst_114 {dimension_numbers = #tpu.dot_dimension_numbers<[1], [0], [0], [1], [0, 0, 1, 1], [], []>} : vector<8x8xf32>, vector<8x8xf32>, vector<8x8xf32> -> vector<8x8xf32>
    %271 = vector.extract_strided_slice %240 {offsets = [0, 16], sizes = [8, 8], strides = [1, 1]} : vector<16x96xf32> to vector<8x8xf32>
    %272 = vector.extract_strided_slice %240 {offsets = [0, 48], sizes = [8, 8], strides = [1, 1]} : vector<16x96xf32> to vector<8x8xf32>
    %273 = vector.extract_strided_slice %240 {offsets = [0, 80], sizes = [8, 8], strides = [1, 1]} : vector<16x96xf32> to vector<8x8xf32>
    %274 = tpu.transpose %272, [1, 0] : vector<8x8xf32> -> vector<8x8xf32>
    %cst_115 = arith.constant dense<0.000000e+00> : vector<8x8xf32>
    %275 = tpu.matmul %271, %274, %cst_115 {dimension_numbers = #tpu.dot_dimension_numbers<[1], [0], [0], [1], [0, 0, 1, 1], [], []>} : vector<8x8xf32>, vector<8x8xf32>, vector<8x8xf32> -> vector<8x8xf32>
    %cst_116 = arith.constant dense<0xFF800000> : vector<8xf32>
    %276 = vector.multi_reduction <maximumf>, %275, %cst_116 [1] : vector<8x8xf32> to vector<8xf32>
    %277 = vector.shape_cast %276 : vector<8xf32> to vector<8x1xf32>
    %278 = vector.broadcast %277 : vector<8x1xf32> to vector<8x8xf32>
    %279 = arith.subf %275, %278 : vector<8x8xf32>
    %280 = math.exp %279 : vector<8x8xf32>
    %cst_117 = arith.constant dense<0.000000e+00> : vector<8xf32>
    %281 = vector.multi_reduction <add>, %280, %cst_117 [1] : vector<8x8xf32> to vector<8xf32>
    %282 = vector.shape_cast %281 : vector<8xf32> to vector<8x1xf32>
    %283 = vector.broadcast %282 : vector<8x1xf32> to vector<8x8xf32>
    %284 = arith.divf %280, %283 : vector<8x8xf32>
    %cst_118 = arith.constant dense<0.000000e+00> : vector<8x8xf32>
    %285 = tpu.matmul %284, %273, %cst_118 {dimension_numbers = #tpu.dot_dimension_numbers<[1], [0], [0], [1], [0, 0, 1, 1], [], []>} : vector<8x8xf32>, vector<8x8xf32>, vector<8x8xf32> -> vector<8x8xf32>
    %286 = vector.extract_strided_slice %240 {offsets = [0, 24], sizes = [8, 8], strides = [1, 1]} : vector<16x96xf32> to vector<8x8xf32>
    %287 = vector.extract_strided_slice %240 {offsets = [0, 56], sizes = [8, 8], strides = [1, 1]} : vector<16x96xf32> to vector<8x8xf32>
    %288 = vector.extract_strided_slice %240 {offsets = [0, 88], sizes = [8, 8], strides = [1, 1]} : vector<16x96xf32> to vector<8x8xf32>
    %289 = tpu.transpose %287, [1, 0] : vector<8x8xf32> -> vector<8x8xf32>
    %cst_119 = arith.constant dense<0.000000e+00> : vector<8x8xf32>
    %290 = tpu.matmul %286, %289, %cst_119 {dimension_numbers = #tpu.dot_dimension_numbers<[1], [0], [0], [1], [0, 0, 1, 1], [], []>} : vector<8x8xf32>, vector<8x8xf32>, vector<8x8xf32> -> vector<8x8xf32>
    %cst_120 = arith.constant dense<0xFF800000> : vector<8xf32>
    %291 = vector.multi_reduction <maximumf>, %290, %cst_120 [1] : vector<8x8xf32> to vector<8xf32>
    %292 = vector.shape_cast %291 : vector<8xf32> to vector<8x1xf32>
    %293 = vector.broadcast %292 : vector<8x1xf32> to vector<8x8xf32>
    %294 = arith.subf %290, %293 : vector<8x8xf32>
    %295 = math.exp %294 : vector<8x8xf32>
    %cst_121 = arith.constant dense<0.000000e+00> : vector<8xf32>
    %296 = vector.multi_reduction <add>, %295, %cst_121 [1] : vector<8x8xf32> to vector<8xf32>
    %297 = vector.shape_cast %296 : vector<8xf32> to vector<8x1xf32>
    %298 = vector.broadcast %297 : vector<8x1xf32> to vector<8x8xf32>
    %299 = arith.divf %295, %298 : vector<8x8xf32>
    %cst_122 = arith.constant dense<0.000000e+00> : vector<8x8xf32>
    %300 = tpu.matmul %299, %288, %cst_122 {dimension_numbers = #tpu.dot_dimension_numbers<[1], [0], [0], [1], [0, 0, 1, 1], [], []>} : vector<8x8xf32>, vector<8x8xf32>, vector<8x8xf32> -> vector<8x8xf32>
    %301 = tpu.concatenate %255, %270, %285, %300 in 1 : vector<8x8xf32>, vector<8x8xf32>, vector<8x8xf32>, vector<8x8xf32> -> vector<8x32xf32>
    %302 = vector.extract_strided_slice %240 {offsets = [8, 0], sizes = [8, 8], strides = [1, 1]} : vector<16x96xf32> to vector<8x8xf32>
    %303 = vector.extract_strided_slice %240 {offsets = [8, 32], sizes = [8, 8], strides = [1, 1]} : vector<16x96xf32> to vector<8x8xf32>
    %304 = vector.extract_strided_slice %240 {offsets = [8, 64], sizes = [8, 8], strides = [1, 1]} : vector<16x96xf32> to vector<8x8xf32>
    %305 = tpu.transpose %303, [1, 0] : vector<8x8xf32> -> vector<8x8xf32>
    %cst_123 = arith.constant dense<0.000000e+00> : vector<8x8xf32>
    %306 = tpu.matmul %302, %305, %cst_123 {dimension_numbers = #tpu.dot_dimension_numbers<[1], [0], [0], [1], [0, 0, 1, 1], [], []>} : vector<8x8xf32>, vector<8x8xf32>, vector<8x8xf32> -> vector<8x8xf32>
    %cst_124 = arith.constant dense<0xFF800000> : vector<8xf32>
    %307 = vector.multi_reduction <maximumf>, %306, %cst_124 [1] : vector<8x8xf32> to vector<8xf32>
    %308 = vector.shape_cast %307 : vector<8xf32> to vector<8x1xf32>
    %309 = vector.broadcast %308 : vector<8x1xf32> to vector<8x8xf32>
    %310 = arith.subf %306, %309 : vector<8x8xf32>
    %311 = math.exp %310 : vector<8x8xf32>
    %cst_125 = arith.constant dense<0.000000e+00> : vector<8xf32>
    %312 = vector.multi_reduction <add>, %311, %cst_125 [1] : vector<8x8xf32> to vector<8xf32>
    %313 = vector.shape_cast %312 : vector<8xf32> to vector<8x1xf32>
    %314 = vector.broadcast %313 : vector<8x1xf32> to vector<8x8xf32>
    %315 = arith.divf %311, %314 : vector<8x8xf32>
    %cst_126 = arith.constant dense<0.000000e+00> : vector<8x8xf32>
    %316 = tpu.matmul %315, %304, %cst_126 {dimension_numbers = #tpu.dot_dimension_numbers<[1], [0], [0], [1], [0, 0, 1, 1], [], []>} : vector<8x8xf32>, vector<8x8xf32>, vector<8x8xf32> -> vector<8x8xf32>
    %317 = vector.extract_strided_slice %240 {offsets = [8, 8], sizes = [8, 8], strides = [1, 1]} : vector<16x96xf32> to vector<8x8xf32>
    %318 = vector.extract_strided_slice %240 {offsets = [8, 40], sizes = [8, 8], strides = [1, 1]} : vector<16x96xf32> to vector<8x8xf32>
    %319 = vector.extract_strided_slice %240 {offsets = [8, 72], sizes = [8, 8], strides = [1, 1]} : vector<16x96xf32> to vector<8x8xf32>
    %320 = tpu.transpose %318, [1, 0] : vector<8x8xf32> -> vector<8x8xf32>
    %cst_127 = arith.constant dense<0.000000e+00> : vector<8x8xf32>
    %321 = tpu.matmul %317, %320, %cst_127 {dimension_numbers = #tpu.dot_dimension_numbers<[1], [0], [0], [1], [0, 0, 1, 1], [], []>} : vector<8x8xf32>, vector<8x8xf32>, vector<8x8xf32> -> vector<8x8xf32>
    %cst_128 = arith.constant dense<0xFF800000> : vector<8xf32>
    %322 = vector.multi_reduction <maximumf>, %321, %cst_128 [1] : vector<8x8xf32> to vector<8xf32>
    %323 = vector.shape_cast %322 : vector<8xf32> to vector<8x1xf32>
    %324 = vector.broadcast %323 : vector<8x1xf32> to vector<8x8xf32>
    %325 = arith.subf %321, %324 : vector<8x8xf32>
    %326 = math.exp %325 : vector<8x8xf32>
    %cst_129 = arith.constant dense<0.000000e+00> : vector<8xf32>
    %327 = vector.multi_reduction <add>, %326, %cst_129 [1] : vector<8x8xf32> to vector<8xf32>
    %328 = vector.shape_cast %327 : vector<8xf32> to vector<8x1xf32>
    %329 = vector.broadcast %328 : vector<8x1xf32> to vector<8x8xf32>
    %330 = arith.divf %326, %329 : vector<8x8xf32>
    %cst_130 = arith.constant dense<0.000000e+00> : vector<8x8xf32>
    %331 = tpu.matmul %330, %319, %cst_130 {dimension_numbers = #tpu.dot_dimension_numbers<[1], [0], [0], [1], [0, 0, 1, 1], [], []>} : vector<8x8xf32>, vector<8x8xf32>, vector<8x8xf32> -> vector<8x8xf32>
    %332 = vector.extract_strided_slice %240 {offsets = [8, 16], sizes = [8, 8], strides = [1, 1]} : vector<16x96xf32> to vector<8x8xf32>
    %333 = vector.extract_strided_slice %240 {offsets = [8, 48], sizes = [8, 8], strides = [1, 1]} : vector<16x96xf32> to vector<8x8xf32>
    %334 = vector.extract_strided_slice %240 {offsets = [8, 80], sizes = [8, 8], strides = [1, 1]} : vector<16x96xf32> to vector<8x8xf32>
    %335 = tpu.transpose %333, [1, 0] : vector<8x8xf32> -> vector<8x8xf32>
    %cst_131 = arith.constant dense<0.000000e+00> : vector<8x8xf32>
    %336 = tpu.matmul %332, %335, %cst_131 {dimension_numbers = #tpu.dot_dimension_numbers<[1], [0], [0], [1], [0, 0, 1, 1], [], []>} : vector<8x8xf32>, vector<8x8xf32>, vector<8x8xf32> -> vector<8x8xf32>
    %cst_132 = arith.constant dense<0xFF800000> : vector<8xf32>
    %337 = vector.multi_reduction <maximumf>, %336, %cst_132 [1] : vector<8x8xf32> to vector<8xf32>
    %338 = vector.shape_cast %337 : vector<8xf32> to vector<8x1xf32>
    %339 = vector.broadcast %338 : vector<8x1xf32> to vector<8x8xf32>
    %340 = arith.subf %336, %339 : vector<8x8xf32>
    %341 = math.exp %340 : vector<8x8xf32>
    %cst_133 = arith.constant dense<0.000000e+00> : vector<8xf32>
    %342 = vector.multi_reduction <add>, %341, %cst_133 [1] : vector<8x8xf32> to vector<8xf32>
    %343 = vector.shape_cast %342 : vector<8xf32> to vector<8x1xf32>
    %344 = vector.broadcast %343 : vector<8x1xf32> to vector<8x8xf32>
    %345 = arith.divf %341, %344 : vector<8x8xf32>
    %cst_134 = arith.constant dense<0.000000e+00> : vector<8x8xf32>
    %346 = tpu.matmul %345, %334, %cst_134 {dimension_numbers = #tpu.dot_dimension_numbers<[1], [0], [0], [1], [0, 0, 1, 1], [], []>} : vector<8x8xf32>, vector<8x8xf32>, vector<8x8xf32> -> vector<8x8xf32>
    %347 = vector.extract_strided_slice %240 {offsets = [8, 24], sizes = [8, 8], strides = [1, 1]} : vector<16x96xf32> to vector<8x8xf32>
    %348 = vector.extract_strided_slice %240 {offsets = [8, 56], sizes = [8, 8], strides = [1, 1]} : vector<16x96xf32> to vector<8x8xf32>
    %349 = vector.extract_strided_slice %240 {offsets = [8, 88], sizes = [8, 8], strides = [1, 1]} : vector<16x96xf32> to vector<8x8xf32>
    %350 = tpu.transpose %348, [1, 0] : vector<8x8xf32> -> vector<8x8xf32>
    %cst_135 = arith.constant dense<0.000000e+00> : vector<8x8xf32>
    %351 = tpu.matmul %347, %350, %cst_135 {dimension_numbers = #tpu.dot_dimension_numbers<[1], [0], [0], [1], [0, 0, 1, 1], [], []>} : vector<8x8xf32>, vector<8x8xf32>, vector<8x8xf32> -> vector<8x8xf32>
    %cst_136 = arith.constant dense<0xFF800000> : vector<8xf32>
    %352 = vector.multi_reduction <maximumf>, %351, %cst_136 [1] : vector<8x8xf32> to vector<8xf32>
    %353 = vector.shape_cast %352 : vector<8xf32> to vector<8x1xf32>
    %354 = vector.broadcast %353 : vector<8x1xf32> to vector<8x8xf32>
    %355 = arith.subf %351, %354 : vector<8x8xf32>
    %356 = math.exp %355 : vector<8x8xf32>
    %cst_137 = arith.constant dense<0.000000e+00> : vector<8xf32>
    %357 = vector.multi_reduction <add>, %356, %cst_137 [1] : vector<8x8xf32> to vector<8xf32>
    %358 = vector.shape_cast %357 : vector<8xf32> to vector<8x1xf32>
    %359 = vector.broadcast %358 : vector<8x1xf32> to vector<8x8xf32>
    %360 = arith.divf %356, %359 : vector<8x8xf32>
    %cst_138 = arith.constant dense<0.000000e+00> : vector<8x8xf32>
    %361 = tpu.matmul %360, %349, %cst_138 {dimension_numbers = #tpu.dot_dimension_numbers<[1], [0], [0], [1], [0, 0, 1, 1], [], []>} : vector<8x8xf32>, vector<8x8xf32>, vector<8x8xf32> -> vector<8x8xf32>
    %362 = tpu.concatenate %316, %331, %346, %361 in 1 : vector<8x8xf32>, vector<8x8xf32>, vector<8x8xf32>, vector<8x8xf32> -> vector<8x32xf32>
    %363 = tpu.concatenate %301, %362 in 0 : vector<8x32xf32>, vector<8x32xf32> -> vector<16x32xf32>
    %cst_139 = arith.constant dense<0.000000e+00> : vector<16x32xf32>
    %364 = tpu.matmul %363, %228, %cst_139 {dimension_numbers = #tpu.dot_dimension_numbers<[1], [0], [0], [1], [0, 0, 1, 1], [], []>} : vector<16x32xf32>, vector<32x32xf32>, vector<16x32xf32> -> vector<16x32xf32>
    %365 = vector.broadcast %229 : vector<1x32xf32> to vector<16x32xf32>
    %366 = arith.addf %364, %365 : vector<16x32xf32>
    %367 = arith.addf %366, %225 : vector<16x32xf32>
    %cst_140 = arith.constant dense<0.000000e+00> : vector<16xf32>
    %368 = vector.multi_reduction <add>, %367, %cst_140 [1] : vector<16x32xf32> to vector<16xf32>
    %369 = vector.shape_cast %368 : vector<16xf32> to vector<16x1xf32>
    %cst_141 = arith.constant 3.200000e+01 : f32
    %370 = vector.broadcast %cst_141 : f32 to vector<16x1xf32>
    %371 = arith.divf %369, %370 : vector<16x1xf32>
    %372 = vector.broadcast %371 : vector<16x1xf32> to vector<16x32xf32>
    %373 = arith.subf %367, %372 : vector<16x32xf32>
    %374 = arith.mulf %373, %373 : vector<16x32xf32>
    %cst_142 = arith.constant dense<0.000000e+00> : vector<16xf32>
    %375 = vector.multi_reduction <add>, %374, %cst_142 [1] : vector<16x32xf32> to vector<16xf32>
    %376 = vector.shape_cast %375 : vector<16xf32> to vector<16x1xf32>
    %cst_143 = arith.constant 3.200000e+01 : f32
    %377 = vector.broadcast %cst_143 : f32 to vector<16x1xf32>
    %378 = arith.divf %376, %377 : vector<16x1xf32>
    %379 = vector.broadcast %371 : vector<16x1xf32> to vector<16x32xf32>
    %380 = arith.subf %367, %379 : vector<16x32xf32>
    %cst_144 = arith.constant 9.99999996E-13 : f32
    %381 = vector.broadcast %cst_144 : f32 to vector<16x1xf32>
    %382 = arith.addf %378, %381 : vector<16x1xf32>
    %383 = math.rsqrt %382 : vector<16x1xf32>
    %384 = vector.broadcast %383 : vector<16x1xf32> to vector<16x32xf32>
    %385 = arith.mulf %380, %384 : vector<16x32xf32>
    %386 = vector.broadcast %230 : vector<1x32xf32> to vector<16x32xf32>
    %387 = arith.mulf %385, %386 : vector<16x32xf32>
    %388 = vector.broadcast %231 : vector<1x32xf32> to vector<16x32xf32>
    %389 = arith.addf %387, %388 : vector<16x32xf32>
    %cst_145 = arith.constant dense<0.000000e+00> : vector<16x64xf32>
    %390 = tpu.matmul %389, %232, %cst_145 {dimension_numbers = #tpu.dot_dimension_numbers<[1], [0], [0], [1], [0, 0, 1, 1], [], []>} : vector<16x32xf32>, vector<32x64xf32>, vector<16x64xf32> -> vector<16x64xf32>
    %391 = vector.broadcast %233 : vector<1x64xf32> to vector<16x64xf32>
    %392 = arith.addf %390, %391 : vector<16x64xf32>
    %cst_146 = arith.constant 5.000000e-01 : f32
    %393 = vector.broadcast %cst_146 : f32 to vector<16x64xf32>
    %394 = arith.mulf %393, %392 : vector<16x64xf32>
    %cst_147 = arith.constant 0.707106769 : f32
    %395 = vector.broadcast %cst_147 : f32 to vector<16x64xf32>
    %396 = arith.mulf %392, %395 : vector<16x64xf32>
    %397 = math.erf %396 : vector<16x64xf32>
    %cst_148 = arith.constant 1.000000e+00 : f32
    %398 = vector.broadcast %cst_148 : f32 to vector<16x64xf32>
    %399 = arith.addf %398, %397 : vector<16x64xf32>
    %400 = arith.mulf %394, %399 : vector<16x64xf32>
    %cst_149 = arith.constant dense<0.000000e+00> : vector<16x32xf32>
    %401 = tpu.matmul %400, %234, %cst_149 {dimension_numbers = #tpu.dot_dimension_numbers<[1], [0], [0], [1], [0, 0, 1, 1], [], []>} : vector<16x64xf32>, vector<64x32xf32>, vector<16x32xf32> -> vector<16x32xf32>
    %402 = vector.broadcast %235 : vector<1x32xf32> to vector<16x32xf32>
    %403 = arith.addf %401, %402 : vector<16x32xf32>
    %404 = arith.addf %403, %389 : vector<16x32xf32>
    %cst_150 = arith.constant dense<0.000000e+00> : vector<16xf32>
    %405 = vector.multi_reduction <add>, %404, %cst_150 [1] : vector<16x32xf32> to vector<16xf32>
    %406 = vector.shape_cast %405 : vector<16xf32> to vector<16x1xf32>
    %cst_151 = arith.constant 3.200000e+01 : f32
    %407 = vector.broadcast %cst_151 : f32 to vector<16x1xf32>
    %408 = arith.divf %406, %407 : vector<16x1xf32>
    %409 = vector.broadcast %408 : vector<16x1xf32> to vector<16x32xf32>
    %410 = arith.subf %404, %409 : vector<16x32xf32>
    %411 = arith.mulf %410, %410 : vector<16x32xf32>
    %cst_152 = arith.constant dense<0.000000e+00> : vector<16xf32>
    %412 = vector.multi_reduction <add>, %411, %cst_152 [1] : vector<16x32xf32> to vector<16xf32>
    %413 = vector.shape_cast %412 : vector<16xf32> to vector<16x1xf32>
    %cst_153 = arith.constant 3.200000e+01 : f32
    %414 = vector.broadcast %cst_153 : f32 to vector<16x1xf32>
    %415 = arith.divf %413, %414 : vector<16x1xf32>
    %416 = vector.broadcast %408 : vector<16x1xf32> to vector<16x32xf32>
    %417 = arith.subf %404, %416 : vector<16x32xf32>
    %cst_154 = arith.constant 9.99999996E-13 : f32
    %418 = vector.broadcast %cst_154 : f32 to vector<16x1xf32>
    %419 = arith.addf %415, %418 : vector<16x1xf32>
    %420 = math.rsqrt %419 : vector<16x1xf32>
    %421 = vector.broadcast %420 : vector<16x1xf32> to vector<16x32xf32>
    %422 = arith.mulf %417, %421 : vector<16x32xf32>
    %423 = vector.broadcast %236 : vector<1x32xf32> to vector<16x32xf32>
    %424 = arith.mulf %422, %423 : vector<16x32xf32>
    %425 = vector.broadcast %237 : vector<1x32xf32> to vector<16x32xf32>
    %426 = arith.addf %424, %425 : vector<16x32xf32>
    %c0_155 = arith.constant 0 : index
    %c0_156 = arith.constant 0 : index
    %427 = vector.load %arg27[%c0_155, %c0_156] : memref<32x32xf32, #tpu.memory_space<vmem>>, vector<32x32xf32>
    %c0_157 = arith.constant 0 : index
    %c0_158 = arith.constant 0 : index
    %428 = vector.load %arg28[%c0_157, %c0_158] : memref<1x32xf32, #tpu.memory_space<vmem>>, vector<1x32xf32>
    %c0_159 = arith.constant 0 : index
    %c0_160 = arith.constant 0 : index
    %429 = vector.load %arg29[%c0_159, %c0_160] : memref<32x2xf32, #tpu.memory_space<vmem>>, vector<32x2xf32>
    %c0_161 = arith.constant 0 : index
    %c0_162 = arith.constant 0 : index
    %430 = vector.load %arg30[%c0_161, %c0_162] : memref<1x2xf32, #tpu.memory_space<vmem>>, vector<1x2xf32>
    %431 = vector.extract_strided_slice %426 {offsets = [0, 0], sizes = [1, 32], strides = [1, 1]} : vector<16x32xf32> to vector<1x32xf32>
    %cst_163 = arith.constant dense<0.000000e+00> : vector<1x32xf32>
    %432 = tpu.matmul %431, %427, %cst_163 {dimension_numbers = #tpu.dot_dimension_numbers<[1], [0], [0], [1], [0, 0, 1, 1], [], []>} : vector<1x32xf32>, vector<32x32xf32>, vector<1x32xf32> -> vector<1x32xf32>
    %433 = arith.addf %432, %428 : vector<1x32xf32>
    %cst_164 = arith.constant 0.000000e+00 : f32
    %434 = vector.broadcast %cst_164 : f32 to vector<1x32xf32>
    %435 = arith.maximumf %433, %434 : vector<1x32xf32>
    %cst_165 = arith.constant dense<0.000000e+00> : vector<1x2xf32>
    %436 = tpu.matmul %435, %429, %cst_165 {dimension_numbers = #tpu.dot_dimension_numbers<[1], [0], [0], [1], [0, 0, 1, 1], [], []>} : vector<1x32xf32>, vector<32x2xf32>, vector<1x2xf32> -> vector<1x2xf32>
    %437 = arith.addf %436, %430 : vector<1x2xf32>
    %c0_166 = arith.constant 0 : index
    %c0_167 = arith.constant 0 : index
    %438 = vector.load %arg31[%c0_166, %c0_167] : memref<2x2xf32, #tpu.memory_space<vmem>>, vector<1x2xf32>
    tpu.vector_store %arg31[%c0_166, %c0_167], %437 {strides = array<i32>} : memref<2x2xf32, #tpu.memory_space<vmem>>, vector<1x2xf32>,
    %439 = vector.extract_strided_slice %426 {offsets = [8, 0], sizes = [1, 32], strides = [1, 1]} : vector<16x32xf32> to vector<1x32xf32>
    %cst_168 = arith.constant dense<0.000000e+00> : vector<1x32xf32>
    %440 = tpu.matmul %439, %427, %cst_168 {dimension_numbers = #tpu.dot_dimension_numbers<[1], [0], [0], [1], [0, 0, 1, 1], [], []>} : vector<1x32xf32>, vector<32x32xf32>, vector<1x32xf32> -> vector<1x32xf32>
    %441 = arith.addf %440, %428 : vector<1x32xf32>
    %cst_169 = arith.constant 0.000000e+00 : f32
    %442 = vector.broadcast %cst_169 : f32 to vector<1x32xf32>
    %443 = arith.maximumf %441, %442 : vector<1x32xf32>
    %cst_170 = arith.constant dense<0.000000e+00> : vector<1x2xf32>
    %444 = tpu.matmul %443, %429, %cst_170 {dimension_numbers = #tpu.dot_dimension_numbers<[1], [0], [0], [1], [0, 0, 1, 1], [], []>} : vector<1x32xf32>, vector<32x2xf32>, vector<1x2xf32> -> vector<1x2xf32>
    %445 = arith.addf %444, %430 : vector<1x2xf32>
    %c1 = arith.constant 1 : index
    %c0_171 = arith.constant 0 : index
    %446 = vector.load %arg31[%c1, %c0_171] : memref<2x2xf32, #tpu.memory_space<vmem>>, vector<1x2xf32>
    tpu.vector_store %arg31[%c1, %c0_171], %445 {strides = array<i32>} : memref<2x2xf32, #tpu.memory_space<vmem>>, vector<1x2xf32>,
    return
  }
}

</mosaic_0001>

<bundles_post_ra>
// kernel: daddy_forward.1
= control target key start
LH: loop header
LB: loop body
LE: loop exit
PB: predicated region body
PF: predicated region fallthrough
CT: control target
= control target key end

     0   :  { %s4982_s6 = smov 1   ;;  %s4983_s10 = smov 2   ;;  %s5670_s0 = inlined_call_operand.smem [shape: u32[32], index: -1, kind: input, shape index: {}] }
   0x1   :  { %s5039_s5 = sld [smem:[%s5670_s0]]   ;;  %s4984_s14 = smov 3  }
   0x2   :  { %s5044_s9 = sld [smem:[%s5670_s0 + %s4982_s6]]   ;;  %s4985_s18 = smov 4  }
   0x3   :  { %s5049_s13 = sld [smem:[%s5670_s0 + %s4983_s10]]   ;;  %s4986_s22 = smov 5  }
   0x4   :  { %s5054_s17 = sld [smem:[%s5670_s0 + %s4984_s14]]   ;;  %s4987_s26 = smov 6  }
   0x5   :  { %s5059_s21 = sld [smem:[%s5670_s0 + %s4985_s18]]   ;;  %s4988_s30 = smov 7  }
   0x6   :  { %s5064_s25 = sld [smem:[%s5670_s0 + %s4986_s22]]   ;;  %s4989_s4 = smov 8  }
   0x7   :  { %s5069_s29 = sld [smem:[%s5670_s0 + %s4987_s26]]   ;;  %s4990_s10 = smov 9  }
   0x8   :  { %s5074_s3 = sld [smem:[%s5670_s0 + %s4988_s30]]   ;;  %s4991_s15 = smov 10  }
   0x9   :  { %s5079_s8 = sld [smem:[%s5670_s0 + %s4989_s4]]   ;;  %s4992_s20 = smov 11  }
   0xa   :  { %s5084_s14 = sld [smem:[%s5670_s0 + %s4990_s10]]   ;;  %s4993_s26 = smov 12  }
   0xb   :  { %s5089_s19 = sld [smem:[%s5670_s0 + %s4991_s15]]   ;;  %s4994_s1 = smov 13  }
   0xc   :  { %s5094_s24 = sld [smem:[%s5670_s0 + %s4992_s20]]   ;;  %s4995_s7 = smov 14  }
   0xd   :  { %s5099_s30 = sld [smem:[%s5670_s0 + %s4993_s26]]   ;;  %s4996_s15 = smov 15  }
   0xe   :  { %s5104_s6 = sld [smem:[%s5670_s0 + %s4994_s1]]   ;;  %s4997_s22 = smov 16  }
   0xf   :  { %s5109_s12 = sld [smem:[%s5670_s0 + %s4995_s7]]   ;;  %s4998_s28 = smov 17  }
  0x10   :  { %s5114_s20 = sld [smem:[%s5670_s0 + %s4996_s15]]   ;;  %s4999_s7 = smov 18  }
  0x11   :  { %s5119_s27 = sld [smem:[%s5670_s0 + %s4997_s22]]   ;;  %s5000_s15 = smov 19  }
  0x12   :  { %s5124_s4 = sld [smem:[%s5670_s0 + %s4998_s28]]   ;;  %s5001_s22 = smov 20  }
  0x13   :  { %s5002_s28 = smov 21  }
  0x14   :  { %5675 = sst [smem:[#allocation5_spill]] %s5104_s6 }
  0x15   :  { %5676 = sst [smem:[#allocation6_spill]] %s5109_s12 }
  0x16   :  { %s5129_s12 = sld [smem:[%s5670_s0 + %s4999_s7]]   ;;  %s5003_s7 = smov 22  }
  0x17   :  { %5677 = sst [smem:[#allocation7_spill]] %s5119_s27 }
  0x18   :  { %5678 = sst [smem:[#allocation8_spill]] %s5124_s4 }
  0x19   :  { %s5134_s6 = sld [smem:[%s5670_s0 + %s5000_s15]]   ;;  %s5004_s15 = smov 23  }
  0x1a   :  { %s5139_s27 = sld [smem:[%s5670_s0 + %s5001_s22]]   ;;  %s5005_s22 = smov 24  }
  0x1b   :  { %s5144_s4 = sld [smem:[%s5670_s0 + %s5002_s28]]   ;;  %s5006_s28 = smov 25  }
  0x1c   :  { %5679 = sst [smem:[#allocation9_spill]] %s5129_s12 }
  0x1d   :  { %s5149_s12 = sld [smem:[%s5670_s0 + %s5003_s7]]   ;;  %s5007_s7 = smov 26  }
  0x1f   :  { %5680 = sst [smem:[#allocation10_spill]] %s5134_s6 }
  0x20   :  { %5681 = sst [smem:[#allocation11_spill]] %s5139_s27 }
  0x21   :  { %5682 = sst [smem:[#allocation12_spill]] %s5144_s4 }
  0x22   :  { %s5154_s6 = sld [smem:[%s5670_s0 + %s5004_s15]]   ;;  %s5008_s15 = smov 27  }
  0x23   :  { %5683 = sst [smem:[#allocation13_spill]] %s5149_s12 }
  0x24   :  { %s5159_s27 = sld [smem:[%s5670_s0 + %s5005_s22]]   ;;  %s5009_s22 = smov 28  }
  0x25   :  { %s5164_s4 = sld [smem:[%s5670_s0 + %s5006_s28]]   ;;  %s5010_s28 = smov 29  }
  0x26   :  { %s5169_s12 = sld [smem:[%s5670_s0 + %s5007_s7]]   ;;  %s5011_s7 = smov 30  }
  0x28   :  { %5684 = sst [smem:[#allocation14_spill]] %s5154_s6 }
  0x29   :  { %s5174_s6 = sld [smem:[%s5670_s0 + %s5008_s15]]   ;;  %s5012_s15 = smov 31  }
  0x2a   :  { %5685 = sst [smem:[#allocation15_spill]] %s5159_s27 }
  0x2b   :  { %5686 = sst [smem:[#allocation16_spill]] %s5164_s4 }
  0x2c   :  { %5687 = sst [smem:[#allocation17_spill]] %s5169_s12 }
  0x2d   :  { %s5179_s27 = sld [smem:[%s5670_s0 + %s5009_s22]]  }
  0x2e   :  { %s5184_s4 = sld [smem:[%s5670_s0 + %s5010_s28]]  }
  0x2f   :  { %5688 = sst [smem:[#allocation18_spill]] %s5174_s6 }
  0x30   :  { %s5189_s12 = sld [smem:[%s5670_s0 + %s5011_s7]]  }
  0x31   :  { %s5194_s6 = sld [smem:[%s5670_s0 + %s5012_s15]]  }
  0x32   :  { %v131_v0 = vld [vmem:[%s5039_s5] sm:$0xff]  ;;  %vm135_vm0 = vcmask 261120   ;;  %v132_v1 = vld [vmem:[%s5039_s5 + $0x8] sm:$0xff] }
  0x33   :  { %68 = vsyncpa [#allocation3], 0  ;;  %v136_v2 = vsel %vm135_vm0, %v131_v0, 0.0  ;;  %v139_v3 = vsel %vm135_vm0, %v132_v1, 0.0  ;;  %v179_v14 = vld [vmem:[%s5054_s17] sm:$0xff]  ;;  %v180_v15 = vld [vmem:[%s5054_s17 + $0x8] sm:$0xff] }
  0x34   :  { %137 = vadd.xlane.f32.xlu0 %v136_v2  ;;  %v181_v16 = vld [vmem:[%s5054_s17 + $0x10] sm:$0xff]  ;;  %v4713_v17 = vpack.c.bf16 %v180_v15, %v179_v14  ;;  %v182_v18 = vld [vmem:[%s5054_s17 + $0x18] sm:$0xff]  ;;  %v4179_v27 = vld [vmem:[%s5044_s9] ss:$0 sm:$0xff]  ;;  %v5013_v36 = vmov 0.0   ;;  %vm5014_vm1 = vmmov 0  }
  0x35   :  { %v4717_v19 = vpack.c.bf16 %v182_v18, %v181_v16  ;;  %v4180_v29 = vld [vmem:[%s5049_s13] ss:$0 sm:$0xff]  ;;  %4416 = vmatprep.subr.mxu1 %v5013_v36  ;;  %4418 = vmatprep.mubr.msk.f32.mxu1 %vm5014_vm1, %v5013_v36  ;;  %s5015_s0 = smov 88   ;;  %s5016_s5 = smov 96   ;;  %vm297_vm2 = vcmask 64512   ;;  %vm967_vm3 = vcmask 130048  }
  0x36   :  { %4714 = vmatprep.subr.bf16.mxu0 %v4713_v17  ;;  %v4181_v37 = vld [vmem:[%s5059_s21] ss:$0 sm:$0xff]  ;;  %s5017_s9 = smov 120   ;;  %s5018_s13 = smov 112   ;;  %vm969_vm4 = vcmask 195584   ;;  %vm1879_vm5 = vcmask 523264  }
  0x37   :  { %4716 = vmatpush3.bf16.msra.mxu0 %v4713_v17  ;;  %s5019_s17 = smov 80   ;;  %s5020_s21 = smov 104   ;;  %vm3984_vm6 = vcmask 8192  }
  0x38   :  { %140 = vadd.xlane.f32.xlu0 %v139_v3  ;;  %4718 = vmatprep.subr.bf16.mxu0 %v4717_v19  ;;  %s5021_s22 = smov 72   ;;  %s5022_s23 = smov 64  }
  0x39   :  { %s5023_s26 = smov 48   ;;  %s5024_s28 = smov 40  }
  0x3a   :  { %s5025_s1 = smov 56   ;;  %s5026_s2 = smov 8  }
  0x3b   :  { %4720 = vmatpush3.bf16.msra.mxu0 %v4717_v19  ;;  %s5027_s7 = smov 16   ;;  %s5028_s10 = smov 24  }
  0x3c   :  { %4426 = vmatprep.subr.mxu0 %v5013_v36  ;;  %s5698_s11 = sld [smem:[#allocation13_spill]]  ;;  %s5699_s15 = sld [smem:[#allocation15_spill]] }
  0x3d   :  { %s5700_s16 = sld [smem:[#allocation18_spill]]  ;;  %s5701_s18 = sld [smem:[#allocation16_spill]] }
  0xc1   :  { %v138_v4 = vpop.xlane.xlu0 %137 }
  0xc2   :  { %v143_v5 = vmul.f32 0.03125, %v138_v4 }
  0xc4   :  { %v145_v6 = vsub.f32 %v131_v0, %v143_v5 }
  0xc5   :  { %v141_v7 = vpop.xlane.xlu0 %140 }
  0xc6   :  { %v144_v8 = vmul.f32 0.03125, %v141_v7  ;;  %v147_v9 = vmul.f32 %v145_v6, %v145_v6 }
  0xc8   :  { %v146_v10 = vsub.f32 %v132_v1, %v144_v8  ;;  %v149_v11 = vsel %vm135_vm0, %v147_v9, 0.0 }
  0xc9   :  { %150 = vadd.xlane.f32.xlu1 %v149_v11 }
  0xca   :  { %v148_v12 = vmul.f32 %v146_v10, %v146_v10 }
  0xcc   :  { %v152_v13 = vsel %vm135_vm0, %v148_v12, 0.0 }
  0xcd   :  { %153 = vadd.xlane.f32.xlu1 %v152_v13 }
 0x156   :  { %v151_v20 = vpop.xlane.xlu1 %150 }
 0x157   :  { %v155_v21 = vmul.f32 0.03125, %v151_v20 }
 0x159   :  { %v157_v22 = vadd.f32 1e-12, %v155_v21 }
 0x15a   :  { %v154_v23 = vpop.xlane.xlu1 %153 }
 0x15b   :  { %4866 = vrsqrt.f32 %v157_v22  ;;  %v156_v24 = vmul.f32 0.03125, %v154_v23 }
 0x15d   :  { %v158_v25 = vadd.f32 1e-12, %v156_v24 }
 0x15f   :  { %4868 = vrsqrt.f32 %v158_v25 }
 0x165   :  { %v4867_v26 = vpop.eup %4866 }
 0x166   :  { %v161_v28 = vmul.f32 %v4867_v26, %v145_v6 }
 0x168   :  { %v169_v30 = vmul.f32 %v4179_v27, %v161_v28 }
 0x169   :  { %v4869_v31 = vpop.eup %4868 }
 0x16a   :  { %v162_v32 = vmul.f32 %v4869_v31, %v146_v10  ;;  %v5208_v33 = vadd.f32 %v4180_v29, %v169_v30 }
 0x16c   :  { %v170_v34 = vmul.f32 %v4179_v27, %v162_v32  ;;  %4413 = vmatprep.mubr.msk.f32.mxu0 %vm135_vm0, %v5208_v33 }
 0x16e   :  { %v5212_v35 = vadd.f32 %v4180_v29, %v170_v34 }
 0x170   :  { %4414 = vmatmul.mubr.msk.f32.vlgmr.msra.gmra.mrb[0].mxu0 %vm135_vm0, %v5212_v35 }
 0x171   :  { %4428 = vmatprep.mubr.msk.f32.mxu0 %vm5014_vm1, %v5013_v36 }
 0x243   :  { %v4415_v38 = vpop.f32.mrb[0].mxu0 }
 0x244   :  { %v285_v39 = vpop.f32.mrb[1].mxu0  ;;  %v5237_v41 = vadd.f32 %v4415_v38, %v4181_v37 }
 0x245   :  { %v5223_v40 = vadd.f32 %v4181_v37, %v285_v39 }
 0x247   :  { %461 = vrot.lane.b32.xlu1 %v5223_v40, %s5015_s0  ;;  %295 = vrot.lane.b32.xlu0 %v5223_v40, %s5016_s5 }
 0x24b   :  { %459 = vrot.lane.b32.xlu1 %v5223_v40, %s5017_s9  ;;  %624 = vrot.lane.b32.xlu0 %v5223_v40, %s5018_s13 }
 0x24f   :  { %626 = vrot.lane.b32.xlu1 %v5223_v40, %s5019_s17  ;;  %789 = vrot.lane.b32.xlu0 %v5223_v40, %s5020_s21 }
 0x253   :  { %791 = vrot.lane.b32.xlu1 %v5223_v40, %s5021_s22  ;;  %1137 = vrot.lane.b32.xlu0 %v5237_v41, %s5015_s0 }
 0x257   :  { %972 = vrot.lane.b32.xlu1 %v5237_v41, %s5016_s5  ;;  %1302 = vrot.lane.b32.xlu0 %v5237_v41, %s5019_s17 }
 0x25b   :  { %1135 = vrot.lane.b32.xlu1 %v5237_v41, %s5017_s9  ;;  %1467 = vrot.lane.b32.xlu0 %v5237_v41, %s5021_s22 }
 0x25f   :  { %1300 = vrot.lane.b32.xlu1 %v5237_v41, %s5018_s13 }
 0x263   :  { %1465 = vrot.lane.b32.xlu1 %v5237_v41, %s5020_s21 }
 0x2b9   :  { %v462_v42 = vpop.permute.xlu1 %461  ;;  %v296_v43 = vpop.permute.xlu0 %295 }
 0x2ba   :  { %4417 = vmatpush3.xpose.msk.msra.mxu1 %vm297_vm2, %v296_v43  ;;  %4427 = vmatpush3.xpose.msk.msra.mxu0 %vm297_vm2, %v462_v42 }
 0x2bb   :  { %4436 = vmatprep.subr.mxu0 %v5013_v36  ;;  %4421 = vmatprep.subr.mxu1 %v5013_v36 }
 0x2bd   :  { %v460_v44 = vpop.permute.xlu1 %459  ;;  %4419 = vmatmul.mubr.msk.f32.vlgmr.msra.gmra.mrb[0].mxu1 %vm297_vm2, %v5223_v40  ;;  %v625_v45 = vpop.permute.xlu0 %624 }
 0x2be   :  { %4429 = vmatmul.mubr.msk.f32.vlgmr.msra.gmra.mrb[2].mxu0 %vm297_vm2, %v460_v44  ;;  %4423 = vmatprep.mubr.msk.f32.mxu1 %vm5014_vm1, %v5013_v36 }
 0x2bf   :  { %4438 = vmatprep.mubr.msk.f32.mxu0 %vm5014_vm1, %v5013_v36 }
 0x2c1   :  { %v627_v46 = vpop.permute.xlu1 %626  ;;  %v790_v47 = vpop.permute.xlu0 %789 }
 0x2c2   :  { %4437 = vmatpush3.xpose.msk.msra.mxu0 %vm297_vm2, %v627_v46 }
 0x2c3   :  { %4446 = vmatprep.subr.mxu0 %v5013_v36 }
 0x2c5   :  { %v792_v48 = vpop.permute.xlu1 %791  ;;  %4439 = vmatmul.mubr.msk.f32.vlgmr.msra.gmra.mrb[4].mxu0 %vm297_vm2, %v625_v45  ;;  %v1138_v49 = vpop.permute.xlu0 %1137 }
 0x2c6   :  { %4447 = vmatpush3.xpose.msk.msra.mxu0 %vm297_vm2, %v792_v48  ;;  %4448 = vmatprep.mubr.msk.f32.mxu0 %vm5014_vm1, %v5013_v36 }
 0x2c7   :  { %4456 = vmatprep.subr.mxu0 %v5013_v36 }
 0x2c9   :  { %v973_v50 = vpop.permute.xlu1 %972  ;;  %4449 = vmatmul.mubr.msk.f32.vlgmr.msra.gmra.mrb[6].mxu0 %vm297_vm2, %v790_v47  ;;  %v1303_v52 = vpop.permute.xlu0 %1302 }
 0x2ca   :  { %4457 = vmatpush3.xpose.msk.msra.mxu0 %vm297_vm2, %v973_v50  ;;  %4458 = vmatprep.mubr.msk.f32.mxu0 %vm5014_vm1, %v5013_v36 }
 0x2cb   :  { %4466 = vmatprep.subr.mxu0 %v5013_v36 }
 0x2cd   :  { %v1136_v51 = vpop.permute.xlu1 %1135  ;;  %4459 = vmatmul.mubr.msk.f32.vlgmr.msra.gmra.mrb[8].mxu0 %vm297_vm2, %v5237_v41  ;;  %v1468_v54 = vpop.permute.xlu0 %1467 }
 0x2ce   :  { %4467 = vmatpush3.xpose.msk.msra.mxu0 %vm297_vm2, %v1138_v49  ;;  %4468 = vmatprep.mubr.msk.f32.mxu0 %vm5014_vm1, %v5013_v36 }
 0x2cf   :  { %4476 = vmatprep.subr.mxu0 %v5013_v36 }
 0x2d1   :  { %4469 = vmatmul.mubr.msk.f32.vlgmr.msra.gmra.mrb[10].mxu0 %vm297_vm2, %v1136_v51  ;;  %v1301_v53 = vpop.permute.xlu1 %1300 }
 0x2d2   :  { %4477 = vmatpush3.xpose.msk.msra.mxu0 %vm297_vm2, %v1303_v52  ;;  %4478 = vmatprep.mubr.msk.f32.mxu0 %vm5014_vm1, %v5013_v36 }
 0x2d3   :  { %4486 = vmatprep.subr.mxu0 %v5013_v36 }
 0x2d5   :  { %4479 = vmatmul.mubr.msk.f32.vlgmr.msra.gmra.mrb[12].mxu0 %vm297_vm2, %v1301_v53  ;;  %v1466_v55 = vpop.permute.xlu1 %1465 }
 0x2d6   :  { %4487 = vmatpush3.xpose.msk.msra.mxu0 %vm297_vm2, %v1468_v54  ;;  %4488 = vmatprep.mubr.msk.f32.mxu0 %vm5014_vm1, %v5013_v36 }
 0x2d9   :  { %4489 = vmatmul.mubr.msk.f32.vlgmr.msra.gmra.mrb[14].mxu0 %vm297_vm2, %v1466_v55 }
 0x390   :  { %v368_v56 = vpop.f32.mrb[0].mxu1 }
 0x391   :  { %v4420_v57 = vpop.f32.mrb[1].mxu1  ;;  %v533_v58 = vpop.f32.mrb[2].mxu0  ;;  %v372_v59 = vsel %vm297_vm2, %v368_v56, -inf }
 0x392   :  { %v4430_v60 = vpop.f32.mrb[3].mxu0  ;;  %373 = vmax.xlane.f32.xlu0 %v372_v59  ;;  %v537_v61 = vsel %vm297_vm2, %v533_v58, -inf }
 0x393   :  { %538 = vmax.xlane.f32.xlu1 %v537_v61 }
 0x398   :  { %v698_v62 = vpop.f32.mrb[4].mxu0 }
 0x399   :  { %v4440_v63 = vpop.f32.mrb[5].mxu0  ;;  %v702_v0 = vsel %vm297_vm2, %v698_v62, -inf }
 0x39a   :  { %703 = vmax.xlane.f32.xlu0 %v702_v0 }
 0x39c   :  { %v863_v1 = vpop.f32.mrb[6].mxu0 }
 0x39d   :  { %v4450_v2 = vpop.f32.mrb[7].mxu0  ;;  %v867_v3 = vsel %vm297_vm2, %v863_v1, -inf }
 0x39e   :  { %868 = vmax.xlane.f32.xlu0 %v867_v3 }
 0x3a0   :  { %v1044_v4 = vpop.f32.mrb[8].mxu0 }
 0x3a1   :  { %v4460_v5 = vpop.f32.mrb[9].mxu0  ;;  %v1048_v6 = vsel %vm297_vm2, %v1044_v4, -inf }
 0x3a2   :  { %1049 = vmax.xlane.f32.xlu0 %v1048_v6 }
 0x3a4   :  { %v1209_v7 = vpop.f32.mrb[10].mxu0 }
 0x3a5   :  { %v4470_v8 = vpop.f32.mrb[11].mxu0  ;;  %v1213_v9 = vsel %vm297_vm2, %v1209_v7, -inf }
 0x3a6   :  { %1214 = vmax.xlane.f32.xlu1 %v1213_v9 }
 0x3a8   :  { %v1374_v10 = vpop.f32.mrb[12].mxu0 }
 0x3a9   :  { %v4480_v11 = vpop.f32.mrb[13].mxu0  ;;  %v1378_v12 = vsel %vm297_vm2, %v1374_v10, -inf }
 0x3aa   :  { %1379 = vmax.xlane.f32.xlu0 %v1378_v12 }
 0x3ac   :  { %v5301_v13 = vpop.f32.mrb[14].mxu0 }
 0x3ad   :  { %v4490_v14 = vpop.f32.mrb[15].mxu0  ;;  %v1543_v15 = vsel %vm297_vm2, %v5301_v13, -inf }
 0x3b7   :  { %383 = vrot.lane.b32.xlu1 %v5223_v40, %s5022_s23 }
 0x3db   :  { %1544 = vmax.xlane.f32.xlu1 %v1543_v15 }
 0x3ec   :  { %713 = vrot.lane.b32.xlu1 %v5223_v40, %s5023_s26 }
 0x3f0   :  { %878 = vrot.lane.b32.xlu1 %v5223_v40, %s5024_s28 }
 0x3f4   :  { %1059 = vrot.lane.b32.xlu1 %v5237_v41, %s5022_s23 }
 0x41f   :  { %v374_v16 = vpop.xlane.xlu0 %373 }
 0x420   :  { %v375_v17 = vsub.f32 %v368_v56, %v374_v16  ;;  %v539_v18 = vpop.xlane.xlu1 %538 }
 0x421   :  { %v540_v19 = vsub.f32 %v533_v58, %v539_v18 }
 0x422   :  { %v376_v20 = vmul.f32 1.442695, %v375_v17 }
 0x423   :  { %v541_v21 = vmul.f32 1.442695, %v540_v19 }
 0x424   :  { %4870 = vpow2.f32 %v376_v20 }
 0x425   :  { %4872 = vpow2.f32 %v541_v21 }
 0x427   :  { %v704_v22 = vpop.xlane.xlu0 %703 }
 0x428   :  { %v705_v37 = vsub.f32 %v698_v62, %v704_v22 }
 0x42a   :  { %v706_v39 = vmul.f32 1.442695, %v705_v37 }
 0x42b   :  { %v869_v23 = vpop.xlane.xlu0 %868 }
 0x42c   :  { %v870_v24 = vsub.f32 %v863_v1, %v869_v23 }
 0x42e   :  { %v4871_v25 = vpop.eup %4870  ;;  %v871_v26 = vmul.f32 1.442695, %v870_v24 }
 0x42f   :  { %v5313_v27 = vpop.eup %4872  ;;  %v378_v28 = vsel %vm297_vm2, %v4871_v25, 0.0  ;;  %v1050_v38 = vpop.xlane.xlu0 %1049 }
 0x430   :  { %4874 = vpow2.f32 %v871_v26  ;;  %379 = vadd.xlane.f32.xlu0 %v378_v28  ;;  %v543_v29 = vsel %vm297_vm2, %v5313_v27, 0.0  ;;  %v1051_v42 = vsub.f32 %v1044_v4, %v1050_v38 }
 0x431   :  { %544 = vadd.xlane.f32.xlu1 %v543_v29  ;;  %4876 = vpow2.f32 %v706_v39  ;;  %v186_v39 = vld [vmem:[%s5064_s25 + $0x10] sm:$0xff] }
 0x432   :  { %v1052_v44 = vmul.f32 1.442695, %v1051_v42  ;;  %v187_v42 = vld [vmem:[%s5064_s25 + $0x18] sm:$0xff] }
 0x433   :  { %v1215_v30 = vpop.xlane.xlu1 %1214 }
 0x434   :  { %4878 = vpow2.f32 %v1052_v44  ;;  %v1216_v46 = vsub.f32 %v1209_v7, %v1215_v30  ;;  %v4725_v44 = vpack.c.bf16 %v187_v42, %v186_v39 }
 0x436   :  { %v1217_v48 = vmul.f32 1.442695, %v1216_v46 }
 0x437   :  { %v384_v31 = vpop.permute.xlu1 %383  ;;  %v1380_v43 = vpop.xlane.xlu0 %1379 }
 0x438   :  { %4422 = vmatpush3.msra.mxu1 %v384_v31  ;;  %v1381_v45 = vsub.f32 %v1374_v10, %v1380_v43  ;;  %v184_v31 = vld [vmem:[%s5064_s25] sm:$0xff] }
 0x439   :  { %4431 = vmatprep.subr.mxu1 %v5013_v36 }
 0x43a   :  { %v5319_v32 = vpop.eup %4874  ;;  %v1382_v47 = vmul.f32 1.442695, %v1381_v45 }
 0x43b   :  { %v873_v34 = vsel %vm297_vm2, %v5319_v32, 0.0  ;;  %v4877_v49 = vpop.eup %4876 }
 0x43c   :  { %874 = vadd.xlane.f32.xlu1 %v873_v34  ;;  %4880 = vpow2.f32 %v1382_v47 }
 0x43d   :  { %4882 = vpow2.f32 %v1217_v48 }
 0x43e   :  { %v4879_v50 = vpop.eup %4878 }
 0x43f   :  { %v1054_v52 = vsel %vm297_vm2, %v4879_v50, 0.0 }
 0x446   :  { %548 = vrot.lane.b32.xlu0 %v5223_v40, %s5025_s1  ;;  %v708_v40 = vsel %vm297_vm2, %v4877_v49, 0.0  ;;  %v5329_v53 = vpop.eup %4880 }
 0x447   :  { %v1384_v56 = vsel %vm297_vm2, %v5329_v53, 0.0  ;;  %v4883_v57 = vpop.eup %4882 }
 0x448   :  { %v1219_v58 = vsel %vm297_vm2, %v4883_v57, 0.0 }
 0x44d   :  { %1224 = vrot.lane.b32.xlu1 %v5237_v41, %s5025_s1 }
 0x465   :  { %709 = vadd.xlane.f32.xlu0 %v708_v40 }
 0x468   :  { %v1545_v51 = vpop.xlane.xlu1 %1544 }
 0x469   :  { %v1546_v54 = vsub.f32 %v5301_v13, %v1545_v51  ;;  %1055 = vadd.xlane.f32.xlu0 %v1054_v52 }
 0x46b   :  { %v1547_v55 = vmul.f32 1.442695, %v1546_v54 }
 0x46c   :  { %v714_v61 = vpop.permute.xlu1 %713 }
 0x46d   :  { %4884 = vpow2.f32 %v1547_v55  ;;  %1385 = vadd.xlane.f32.xlu0 %v1384_v56 }
 0x470   :  { %v879_v62 = vpop.permute.xlu1 %878 }
 0x471   :  { %1220 = vadd.xlane.f32.xlu1 %v1219_v58 }
 0x474   :  { %v1060_v63 = vpop.permute.xlu1 %1059 }
 0x477   :  { %v5335_v59 = vpop.eup %4884 }
 0x478   :  { %v1549_v60 = vsel %vm297_vm2, %v5335_v59, 0.0 }
 0x479   :  { %1550 = vadd.xlane.f32.xlu0 %v1549_v60 }
 0x482   :  { %1554 = vrot.lane.b32.xlu1 %v5237_v41, %s5024_s28 }
 0x48f   :  { %1389 = vrot.lane.b32.xlu0 %v5237_v41, %s5023_s26 }
 0x4bd   :  { %v380_v0 = vpop.xlane.xlu0 %379 }
 0x4be   :  { %4886 = vrcp.f32 %v380_v0  ;;  %v545_v1 = vpop.xlane.xlu1 %544 }
 0x4bf   :  { %4888 = vrcp.f32 %v545_v1  ;;  %v4208_v1 = vld [vmem:[%s5069_s29] ss:$0 sm:$0xff]  ;;  %s5690_s29 = sld [smem:[#allocation6_spill]] }
 0x4c1   :  { %v549_v5 = vpop.permute.xlu0 %548 }
 0x4c8   :  { %v4887_v2 = vpop.eup %4886 }
 0x4c9   :  { %v382_v3 = vmul.f32 %v4887_v2, %v4871_v25  ;;  %v4889_v4 = vpop.eup %4888  ;;  %v875_v41 = vpop.xlane.xlu1 %874 }
 0x4ca   :  { %v547_v6 = vmul.f32 %v4889_v4, %v5313_v27 }
 0x4cb   :  { %4424 = vmatmul.mubr.msk.f32.vlgmr.msra.gmra.mrb[2].mxu1 %vm297_vm2, %v382_v3 }
 0x4cc   :  { %4432 = vmatpush3.msra.mxu1 %v549_v5  ;;  %4433 = vmatprep.mubr.msk.f32.mxu1 %vm5014_vm1, %v5013_v36 }
 0x4cd   :  { %4441 = vmatprep.subr.mxu1 %v5013_v36  ;;  %v1225_v9 = vpop.permute.xlu1 %1224 }
 0x4cf   :  { %4434 = vmatmul.mubr.msk.f32.vlgmr.msra.gmra.mrb[4].mxu1 %vm297_vm2, %v547_v6 }
 0x4d0   :  { %4442 = vmatpush3.msra.mxu1 %v714_v61  ;;  %4443 = vmatprep.mubr.msk.f32.mxu1 %vm5014_vm1, %v5013_v36 }
 0x4d1   :  { %4451 = vmatprep.subr.mxu1 %v5013_v36 }
 0x4f2   :  { %v710_v7 = vpop.xlane.xlu0 %709 }
 0x4f3   :  { %4890 = vrcp.f32 %v710_v7 }
 0x4f4   :  { %4892 = vrcp.f32 %v875_v41 }
 0x4f6   :  { %v1056_v8 = vpop.xlane.xlu0 %1055 }
 0x4f7   :  { %4894 = vrcp.f32 %v1056_v8 }
 0x4fa   :  { %v1386_v12 = vpop.xlane.xlu0 %1385 }
 0x4fd   :  { %v4891_v10 = vpop.eup %4890 }
 0x4fe   :  { %v712_v11 = vmul.f32 %v4891_v10, %v4877_v49  ;;  %v1221_v13 = vpop.xlane.xlu1 %1220  ;;  %v4893_v14 = vpop.eup %4892 }
 0x4ff   :  { %4896 = vrcp.f32 %v1221_v13  ;;  %v877_v15 = vmul.f32 %v4893_v14, %v5319_v32  ;;  %v185_v32 = vld [vmem:[%s5064_s25 + $0x8] sm:$0xff]  ;;  %s5689_s25 = sld [smem:[#allocation5_spill]] }
 0x500   :  { %4444 = vmatmul.mubr.msk.f32.vlgmr.msra.gmra.mrb[6].mxu1 %vm297_vm2, %v712_v11  ;;  %4898 = vrcp.f32 %v1386_v12  ;;  %v4721_v37 = vpack.c.bf16 %v185_v32, %v184_v31  ;;  %v4212_v32 = vld [vmem:[%s5079_s8] ss:$0 sm:$0xff]  ;;  %s5692_s8 = sld [smem:[#allocation8_spill]] }
 0x501   :  { %4452 = vmatpush3.msra.mxu1 %v879_v62  ;;  %4453 = vmatprep.mubr.msk.f32.mxu1 %vm5014_vm1, %v5013_v36  ;;  %v4895_v16 = vpop.eup %4894 }
 0x502   :  { %4461 = vmatprep.subr.mxu1 %v5013_v36  ;;  %v1058_v17 = vmul.f32 %v4895_v16, %v4879_v50  ;;  %v1555_v24 = vpop.permute.xlu1 %1554  ;;  %4722 = vmatprep.subr.bf16.mxu0 %v4721_v37 }
 0x503   :  { %4724 = vmatpush3.bf16.msra.mxu0 %v4721_v37 }
 0x504   :  { %4454 = vmatmul.mubr.msk.f32.vlgmr.msra.gmra.mrb[8].mxu1 %vm297_vm2, %v877_v15  ;;  %4726 = vmatprep.subr.bf16.mxu0 %v4725_v44 }
 0x505   :  { %4462 = vmatpush3.msra.mxu1 %v1060_v63  ;;  %4463 = vmatprep.mubr.msk.f32.mxu1 %vm5014_vm1, %v5013_v36 }
 0x506   :  { %v1551_v18 = vpop.xlane.xlu0 %1550  ;;  %4471 = vmatprep.subr.mxu1 %v5013_v36 }
 0x507   :  { %4900 = vrcp.f32 %v1551_v18  ;;  %4728 = vmatpush3.bf16.msra.mxu0 %v4725_v44  ;;  %v192_v18 = vld [vmem:[%s5084_s14 + $0x8] sm:$0xff]  ;;  %v196_v44 = vld [vmem:[%s5094_s24] sm:$0xff] }
 0x508   :  { %4464 = vmatmul.mubr.msk.f32.vlgmr.msra.gmra.mrb[10].mxu1 %vm297_vm2, %v1058_v17  ;;  %v191_v17 = vld [vmem:[%s5084_s14] sm:$0xff] }
 0x509   :  { %v4897_v19 = vpop.eup %4896  ;;  %4472 = vmatpush3.msra.mxu1 %v1225_v9  ;;  %4473 = vmatprep.mubr.msk.f32.mxu1 %vm5014_vm1, %v5013_v36 }
 0x50a   :  { %v1223_v20 = vmul.f32 %v4897_v19, %v4883_v57  ;;  %v1390_v21 = vpop.permute.xlu0 %1389  ;;  %4481 = vmatprep.subr.mxu1 %v5013_v36  ;;  %v4899_v22 = vpop.eup %4898  ;;  %v4729_v19 = vpack.c.bf16 %v192_v18, %v191_v17 }
 0x50b   :  { %v1388_v23 = vmul.f32 %v4899_v22, %v5329_v53 }
 0x50c   :  { %4474 = vmatmul.mubr.msk.f32.vlgmr.msra.gmra.mrb[12].mxu1 %vm297_vm2, %v1223_v20  ;;  %v193_v20 = vld [vmem:[%s5084_s14 + $0x10] sm:$0xff] }
 0x50d   :  { %4482 = vmatpush3.msra.mxu1 %v1390_v21  ;;  %4483 = vmatprep.mubr.msk.f32.mxu1 %vm5014_vm1, %v5013_v36  ;;  %v194_v21 = vld [vmem:[%s5084_s14 + $0x18] sm:$0xff]  ;;  %s5693_s14 = sld [smem:[#allocation9_spill]] }
 0x50e   :  { %4491 = vmatprep.subr.mxu1 %v5013_v36  ;;  %v4733_v22 = vpack.c.bf16 %v194_v21, %v193_v20 }
 0x510   :  { %4484 = vmatmul.mubr.msk.f32.vlgmr.msra.gmra.mrb[14].mxu1 %vm297_vm2, %v1388_v23 }
 0x511   :  { %v4901_v25 = vpop.eup %4900  ;;  %4492 = vmatpush3.msra.mxu1 %v1555_v24  ;;  %4493 = vmatprep.mubr.msk.f32.mxu1 %vm5014_vm1, %v5013_v36 }
 0x512   :  { %v1553_v26 = vmul.f32 %v4901_v25, %v5335_v59  ;;  %4730 = vmatprep.subr.bf16.mxu1 %v4729_v19 }
 0x514   :  { %4494 = vmatmul.mubr.msk.f32.vlgmr.msra.gmra.mrb[16].mxu1 %vm297_vm2, %v1553_v26 }
 0x515   :  { %4732 = vmatpush3.bf16.msra.mxu1 %v4729_v19 }
 0x516   :  { %4734 = vmatprep.subr.bf16.mxu1 %v4733_v22 }
 0x519   :  { %4736 = vmatpush3.bf16.msra.mxu1 %v4733_v22  ;;  %v2005_v22 = vld [vmem:[%s5114_s20] sm:$0xff] }
 0x59e   :  { %v455_v27 = vpop.f32.mrb[2].mxu1 }
 0x59f   :  { %v4425_v28 = vpop.f32.mrb[3].mxu1 }
 0x5a2   :  { %v620_v29 = vpop.f32.mrb[4].mxu1 }
 0x5a3   :  { %955 = vrot.lane.b32.xlu0 %v620_v29, %s5026_s2  ;;  %v4435_v30 = vpop.f32.mrb[5].mxu1 }
 0x5a4   :  { %v4211_v30 = vld [vmem:[%s5074_s3] ss:$0 sm:$0xff]  ;;  %s5691_s3 = sld [smem:[#allocation7_spill]] }
 0x5d3   :  { %v785_v34 = vpop.f32.mrb[6].mxu1 }
 0x5d4   :  { %959 = vrot.lane.b32.xlu1 %v785_v34, %s5027_s7  ;;  %v4445_v38 = vpop.f32.mrb[7].mxu1 }
 0x5d7   :  { %v950_v43 = vpop.f32.mrb[8].mxu1 }
 0x5d8   :  { %963 = vrot.lane.b32.xlu1 %v950_v43, %s5028_s10  ;;  %v4455_v45 = vpop.f32.mrb[9].mxu1 }
 0x5d9   :  { %v197_v45 = vld [vmem:[%s5094_s24 + $0x8] sm:$0xff] }
 0x5db   :  { %v1131_v46 = vpop.f32.mrb[10].mxu1 }
 0x5dc   :  { %v4465_v47 = vpop.f32.mrb[11].mxu1 }
 0x5dd   :  { %v198_v47 = vld [vmem:[%s5094_s24 + $0x10] sm:$0xff] }
 0x5df   :  { %v1296_v48 = vpop.f32.mrb[12].mxu1 }
 0x5e0   :  { %1631 = vrot.lane.b32.xlu0 %v1296_v48, %s5026_s2  ;;  %v4475_v49 = vpop.f32.mrb[13].mxu1  ;;  %v199_v48 = vld [vmem:[%s5094_s24 + $0x18] sm:$0xff] }
 0x5e1   :  { %v4741_v49 = vpack.c.bf16 %v199_v48, %v198_v47 }
 0x5e3   :  { %v1461_v40 = vpop.f32.mrb[14].mxu1 }
 0x5e4   :  { %1635 = vrot.lane.b32.xlu0 %v1461_v40, %s5027_s7  ;;  %v4485_v50 = vpop.f32.mrb[15].mxu1  ;;  %v200_v40 = vld [vmem:[%s5094_s24 + $0x20] sm:$0xff] }
 0x5e5   :  { %v201_v50 = vld [vmem:[%s5094_s24 + $0x28] sm:$0xff] }
 0x5e7   :  { %v1626_v51 = vpop.f32.mrb[16].mxu1 }
 0x5e8   :  { %1639 = vrot.lane.b32.xlu1 %v1626_v51, %s5028_s10  ;;  %v4495_v52 = vpop.f32.mrb[17].mxu1  ;;  %v4745_v51 = vpack.c.bf16 %v201_v50, %v200_v40 }
 0x5e9   :  { %v202_v52 = vld [vmem:[%s5094_s24 + $0x30] sm:$0xff] }
 0x615   :  { %v956_v53 = vpop.permute.xlu0 %955 }
 0x616   :  { %v966_v55 = vsel %vm297_vm2, %v455_v27, %v956_v53  ;;  %v203_v53 = vld [vmem:[%s5094_s24 + $0x38] sm:$0xff]  ;;  %s5695_s24 = sld [smem:[#allocation10_spill]] }
 0x646   :  { %v960_v54 = vpop.permute.xlu1 %959 }
 0x647   :  { %v968_v56 = vsel %vm967_vm3, %v966_v55, %v960_v54  ;;  %v4749_v54 = vpack.c.bf16 %v203_v53, %v202_v52  ;;  %v4213_v55 = vld [vmem:[%s5089_s19] ss:$0 sm:$0xff]  ;;  %s5694_s19 = sld [smem:[#allocation12_spill]] }
 0x64a   :  { %v964_v57 = vpop.permute.xlu1 %963 }
 0x64b   :  { %v970_v58 = vsel %vm969_vm4, %v968_v56, %v964_v57 }
 0x64c   :  { %4504 = vmatprep.mubr.msk.f32.mxu0 %vm135_vm0, %v970_v58 }
 0x652   :  { %v1632_v59 = vpop.permute.xlu0 %1631 }
 0x653   :  { %v1642_v61 = vsel %vm297_vm2, %v1131_v46, %v1632_v59  ;;  %v4737_v46 = vpack.c.bf16 %v197_v45, %v196_v44  ;;  %v4220_v44 = vld [vmem:[%s5690_s29] ss:$0 sm:$0xff] }
 0x655   :  { %4738 = vmatprep.subr.bf16.mxu0 %v4737_v46 }
 0x656   :  { %v1636_v60 = vpop.permute.xlu0 %1635 }
 0x657   :  { %v1643_v62 = vsel %vm967_vm3, %v1642_v61, %v1636_v60 }
 0x65a   :  { %v1640_v63 = vpop.permute.xlu1 %1639 }
 0x65b   :  { %v1644_v0 = vsel %vm969_vm4, %v1643_v62, %v1640_v63 }
 0x65c   :  { %4505 = vmatmul.mubr.msk.f32.vlgmr.msra.gmra.mrb[16].mxu0 %vm135_vm0, %v1644_v0 }
 0x65d   :  { %4740 = vmatpush3.bf16.msra.mxu0 %v4737_v46 }
 0x65e   :  { %4742 = vmatprep.subr.bf16.mxu0 %v4741_v49 }
 0x661   :  { %4744 = vmatpush3.bf16.msra.mxu0 %v4741_v49  ;;  %v4221_v49 = vld [vmem:[%s5691_s3] ss:$0 sm:$0xff] }
 0x662   :  { %4746 = vmatprep.subr.bf16.mxu0 %v4745_v51 }
 0x665   :  { %4748 = vmatpush3.bf16.msra.mxu0 %v4745_v51 }
 0x666   :  { %4750 = vmatprep.subr.bf16.mxu0 %v4749_v54 }
 0x669   :  { %4752 = vmatpush3.bf16.msra.mxu0 %v4749_v54 }
 0x66a   :  { %4558 = vmatprep.subr.mxu0 %v5013_v36 }
 0x72f   :  { %v4506_v2 = vpop.f32.mrb[16].mxu0 }
 0x730   :  { %v1729_v3 = vadd.f32 %v4506_v2, %v4208_v1  ;;  %v1723_v4 = vpop.f32.mrb[17].mxu0 }
 0x731   :  { %v1724_v5 = vadd.f32 %v4208_v1, %v1723_v4 }
 0x732   :  { %v1733_v6 = vadd.f32 %v1729_v3, %v5212_v35 }
 0x733   :  { %v1732_v41 = vadd.f32 %v1724_v5, %v5208_v33 }
 0x734   :  { %v1737_v7 = vsel %vm135_vm0, %v1733_v6, 0.0 }
 0x735   :  { %1738 = vadd.xlane.f32.xlu1 %v1737_v7  ;;  %v1734_v8 = vsel %vm135_vm0, %v1732_v41, 0.0 }
 0x736   :  { %1735 = vadd.xlane.f32.xlu0 %v1734_v8 }
 0x7c2   :  { %v1739_v9 = vpop.xlane.xlu1 %1738 }
 0x7c3   :  { %v1741_v10 = vmul.f32 0.03125, %v1739_v9  ;;  %v1736_v11 = vpop.xlane.xlu0 %1735 }
 0x7c4   :  { %v1740_v12 = vmul.f32 0.03125, %v1736_v11 }
 0x7c5   :  { %v1743_v13 = vsub.f32 %v1733_v6, %v1741_v10  ;;  %v4216_v6 = vld [vmem:[%s5099_s30] ss:$0 sm:$0xff]  ;;  %s5696_s30 = sld [smem:[#allocation11_spill]] }
 0x7c6   :  { %v1742_v14 = vsub.f32 %v1732_v41, %v1740_v12 }
 0x7c7   :  { %v1745_v33 = vmul.f32 %v1743_v13, %v1743_v13 }
 0x7c8   :  { %v1744_v15 = vmul.f32 %v1742_v14, %v1742_v14 }
 0x7c9   :  { %v1749_v16 = vsel %vm135_vm0, %v1745_v33, 0.0 }
 0x7ca   :  { %v1746_v35 = vsel %vm135_vm0, %v1744_v15, 0.0 }
 0x7cb   :  { %1747 = vadd.xlane.f32.xlu0 %v1746_v35 }
 0x7cf   :  { %1750 = vadd.xlane.f32.xlu0 %v1749_v16 }
 0x858   :  { %v1748_v23 = vpop.xlane.xlu0 %1747 }
 0x859   :  { %v1752_v24 = vmul.f32 0.03125, %v1748_v23  ;;  %v2006_v23 = vld [vmem:[%s5114_s20 + $0x8] sm:$0xff] }
 0x85b   :  { %v1754_v25 = vadd.f32 1e-12, %v1752_v24  ;;  %v4753_v24 = vpack.c.bf16 %v2006_v23, %v2005_v22 }
 0x85c   :  { %v1751_v26 = vpop.xlane.xlu0 %1750 }
 0x85d   :  { %4902 = vrsqrt.f32 %v1754_v25  ;;  %v1753_v27 = vmul.f32 0.03125, %v1751_v26  ;;  %v2007_v25 = vld [vmem:[%s5114_s20 + $0x10] sm:$0xff]  ;;  %v2008_v26 = vld [vmem:[%s5114_s20 + $0x18] sm:$0xff]  ;;  %4754 = vmatprep.subr.bf16.mxu1 %v4753_v24  ;;  %s5697_s20 = sld [smem:[#allocation14_spill]] }
 0x85f   :  { %v1755_v28 = vadd.f32 1e-12, %v1753_v27  ;;  %v4757_v27 = vpack.c.bf16 %v2008_v26, %v2007_v25 }
 0x861   :  { %4904 = vrsqrt.f32 %v1755_v28 }
 0x867   :  { %v4903_v29 = vpop.eup %4902 }
 0x868   :  { %v1758_v31 = vmul.f32 %v4903_v29, %v1742_v14 }
 0x86a   :  { %v1766_v34 = vmul.f32 %v4211_v30, %v1758_v31 }
 0x86b   :  { %v4905_v37 = vpop.eup %4904 }
 0x86c   :  { %v1759_v38 = vmul.f32 %v4905_v37, %v1743_v13  ;;  %v1774_v39 = vadd.f32 %v4212_v32, %v1766_v34 }
 0x86e   :  { %v1767_v42 = vmul.f32 %v4211_v30, %v1759_v38  ;;  %4515 = vmatprep.mubr.msk.f32.mxu1 %vm135_vm0, %v1774_v39  ;;  %v4219_v38 = vld [vmem:[%s5689_s25] ss:$0 sm:$0xff] }
 0x870   :  { %v1775_v43 = vadd.f32 %v4212_v32, %v1767_v42 }
 0x872   :  { %4516 = vmatmul.mubr.msk.f32.vlgmr.msra.gmra.mrb[18].mxu1 %vm135_vm0, %v1775_v43 }
 0x873   :  { %4756 = vmatpush3.bf16.msra.mxu1 %v4753_v24 }
 0x874   :  { %4758 = vmatprep.subr.bf16.mxu1 %v4757_v27 }
 0x877   :  { %4760 = vmatpush3.bf16.msra.mxu1 %v4757_v27 }
 0x878   :  { %4548 = vmatprep.subr.mxu1 %v5013_v36 }
 0x945   :  { %v4517_v56 = vpop.f32.mrb[18].mxu1 }
 0x946   :  { %v1860_v57 = vadd.f32 %v4517_v56, %v4213_v55  ;;  %v1854_v58 = vpop.f32.mrb[19].mxu1 }
 0x947   :  { %v1855_v59 = vadd.f32 %v4213_v55, %v1854_v58 }
 0x948   :  { %v1866_v60 = vmul.f32 0.70710677, %v1860_v57  ;;  %v1864_v3 = vmul.f32 0.5, %v1860_v57 }
 0x949   :  { %v1865_v61 = vmul.f32 0.70710677, %v1855_v59  ;;  %v1863_v1 = vmul.f32 0.5, %v1855_v59 }
 0x94a   :  { %4906 = verf.f32 %v1866_v60 }
 0x94b   :  { %4908 = verf.f32 %v1865_v61 }
 0x954   :  { %v4907_v62 = vpop.eup %4906 }
 0x955   :  { %v4909_v63 = vpop.eup %4908  ;;  %v1870_v0 = vadd.f32 1.0, %v4907_v62 }
 0x956   :  { %v1869_v2 = vadd.f32 1.0, %v4909_v63 }
 0x957   :  { %v1872_v5 = vmul.f32 %v1870_v0, %v1864_v3 }
 0x958   :  { %v1871_v4 = vmul.f32 %v1869_v2, %v1863_v1 }
 0x95a   :  { %4534 = vmatprep.mubr.msk.f32.mxu0 %vm1879_vm5, %v1871_v4 }
 0x95b   :  { %4535 = vmatmul.mubr.msk.f32.vlgmr.msra.gmra.mrb[18].mxu0 %vm1879_vm5, %v1872_v5 }
 0x95c   :  { %4560 = vmatprep.mubr.msk.f32.mxu0 %vm5014_vm1, %v5013_v36 }
 0xa2e   :  { %v4536_v41 = vpop.f32.mrb[18].mxu0 }
 0xa2f   :  { %v1958_v7 = vadd.f32 %v4536_v41, %v4216_v6  ;;  %v1952_v8 = vpop.f32.mrb[19].mxu0 }
 0xa30   :  { %v1953_v9 = vadd.f32 %v4216_v6, %v1952_v8 }
 0xa31   :  { %v1962_v10 = vadd.f32 %v1958_v7, %v1775_v43 }
 0xa32   :  { %v1961_v11 = vadd.f32 %v1953_v9, %v1774_v39 }
 0xa33   :  { %v1966_v12 = vsel %vm135_vm0, %v1962_v10, 0.0 }
 0xa34   :  { %1967 = vadd.xlane.f32.xlu1 %v1966_v12  ;;  %v1963_v13 = vsel %vm135_vm0, %v1961_v11, 0.0 }
 0xa35   :  { %1964 = vadd.xlane.f32.xlu0 %v1963_v13 }
 0xac1   :  { %v1968_v14 = vpop.xlane.xlu1 %1967 }
 0xac2   :  { %v1970_v15 = vmul.f32 0.03125, %v1968_v14  ;;  %v1965_v35 = vpop.xlane.xlu0 %1964 }
 0xac3   :  { %v1969_v33 = vmul.f32 0.03125, %v1965_v35 }
 0xac4   :  { %v1972_v16 = vsub.f32 %v1962_v10, %v1970_v15 }
 0xac5   :  { %v1971_v17 = vsub.f32 %v1961_v11, %v1969_v33 }
 0xac6   :  { %v1974_v18 = vmul.f32 %v1972_v16, %v1972_v16 }
 0xac7   :  { %v1973_v19 = vmul.f32 %v1971_v17, %v1971_v17 }
 0xac8   :  { %v1978_v20 = vsel %vm135_vm0, %v1974_v18, 0.0 }
 0xac9   :  { %1979 = vadd.xlane.f32.xlu1 %v1978_v20  ;;  %v1975_v21 = vsel %vm135_vm0, %v1973_v19, 0.0 }
 0xaca   :  { %1976 = vadd.xlane.f32.xlu0 %v1975_v21 }
 0xb56   :  { %v1980_v28 = vpop.xlane.xlu1 %1979 }
 0xb57   :  { %v1982_v29 = vmul.f32 0.03125, %v1980_v28  ;;  %v1977_v30 = vpop.xlane.xlu0 %1976 }
 0xb58   :  { %v1981_v31 = vmul.f32 0.03125, %v1977_v30 }
 0xb59   :  { %v1984_v32 = vadd.f32 1e-12, %v1982_v29 }
 0xb5a   :  { %v1983_v34 = vadd.f32 1e-12, %v1981_v31 }
 0xb5b   :  { %4910 = vrsqrt.f32 %v1984_v32 }
 0xb5c   :  { %4912 = vrsqrt.f32 %v1983_v34 }
 0xb65   :  { %v4911_v37 = vpop.eup %4910 }
 0xb66   :  { %v4913_v39 = vpop.eup %4912  ;;  %v1988_v42 = vmul.f32 %v4911_v37, %v1972_v16 }
 0xb67   :  { %v1987_v43 = vmul.f32 %v4913_v39, %v1971_v17 }
 0xb68   :  { %v1996_v45 = vmul.f32 %v4219_v38, %v1988_v42 }
 0xb69   :  { %v1995_v46 = vmul.f32 %v4219_v38, %v1987_v43 }
 0xb6a   :  { %v5436_v48 = vadd.f32 %v4220_v44, %v1996_v45 }
 0xb6b   :  { %v5434_v47 = vadd.f32 %v4220_v44, %v1995_v46 }
 0xb6d   :  { %4545 = vmatprep.mubr.msk.f32.mxu1 %vm135_vm0, %v5434_v47 }
 0xb6e   :  { %4546 = vmatmul.mubr.msk.f32.vlgmr.msra.gmra.mrb[20].mxu1 %vm135_vm0, %v5436_v48 }
 0xb6f   :  { %4550 = vmatprep.mubr.msk.f32.mxu1 %vm5014_vm1, %v5013_v36 }
 0xc41   :  { %v4547_v40 = vpop.f32.mrb[20].mxu1 }
 0xc42   :  { %v2111_v50 = vpop.f32.mrb[21].mxu1  ;;  %v5459_v52 = vadd.f32 %v4547_v40, %v4221_v49 }
 0xc43   :  { %v5445_v51 = vadd.f32 %v4221_v49, %v2111_v50 }
 0xc45   :  { %2286 = vrot.lane.b32.xlu1 %v5445_v51, %s5015_s0  ;;  %2121 = vrot.lane.b32.xlu0 %v5445_v51, %s5016_s5 }
 0xc49   :  { %2284 = vrot.lane.b32.xlu1 %v5445_v51, %s5017_s9  ;;  %2449 = vrot.lane.b32.xlu0 %v5445_v51, %s5018_s13 }
 0xc4d   :  { %2451 = vrot.lane.b32.xlu1 %v5445_v51, %s5019_s17  ;;  %2614 = vrot.lane.b32.xlu0 %v5445_v51, %s5020_s21 }
 0xc51   :  { %2616 = vrot.lane.b32.xlu1 %v5445_v51, %s5021_s22  ;;  %2960 = vrot.lane.b32.xlu0 %v5459_v52, %s5015_s0  ;;  %s5702_s0 = sld [smem:[#allocation17_spill]] }
 0xc55   :  { %2795 = vrot.lane.b32.xlu1 %v5459_v52, %s5016_s5  ;;  %3125 = vrot.lane.b32.xlu0 %v5459_v52, %s5019_s17 }
 0xc59   :  { %2958 = vrot.lane.b32.xlu1 %v5459_v52, %s5017_s9  ;;  %3290 = vrot.lane.b32.xlu0 %v5459_v52, %s5021_s22 }
 0xc5d   :  { %3123 = vrot.lane.b32.xlu1 %v5459_v52, %s5018_s13 }
 0xc61   :  { %3288 = vrot.lane.b32.xlu1 %v5459_v52, %s5020_s21 }
 0xcb7   :  { %v2287_v53 = vpop.permute.xlu1 %2286  ;;  %v2122_v54 = vpop.permute.xlu0 %2121 }
 0xcb8   :  { %4549 = vmatpush3.xpose.msk.msra.mxu1 %vm297_vm2, %v2122_v54  ;;  %4559 = vmatpush3.xpose.msk.msra.mxu0 %vm297_vm2, %v2287_v53 }
 0xcb9   :  { %4568 = vmatprep.subr.mxu0 %v5013_v36  ;;  %4553 = vmatprep.subr.mxu1 %v5013_v36 }
 0xcbb   :  { %v2285_v55 = vpop.permute.xlu1 %2284  ;;  %4551 = vmatmul.mubr.msk.f32.vlgmr.msra.gmra.mrb[22].mxu1 %vm297_vm2, %v5445_v51  ;;  %v2450_v56 = vpop.permute.xlu0 %2449 }
 0xcbc   :  { %4561 = vmatmul.mubr.msk.f32.vlgmr.msra.gmra.mrb[20].mxu0 %vm297_vm2, %v2285_v55  ;;  %4555 = vmatprep.mubr.msk.f32.mxu1 %vm5014_vm1, %v5013_v36 }
 0xcbd   :  { %4570 = vmatprep.mubr.msk.f32.mxu0 %vm5014_vm1, %v5013_v36 }
 0xcbf   :  { %v2452_v57 = vpop.permute.xlu1 %2451  ;;  %v2615_v58 = vpop.permute.xlu0 %2614 }
 0xcc0   :  { %4569 = vmatpush3.xpose.msk.msra.mxu0 %vm297_vm2, %v2452_v57 }
 0xcc1   :  { %4578 = vmatprep.subr.mxu0 %v5013_v36 }
 0xcc3   :  { %v2617_v59 = vpop.permute.xlu1 %2616  ;;  %4571 = vmatmul.mubr.msk.f32.vlgmr.msra.gmra.mrb[22].mxu0 %vm297_vm2, %v2450_v56  ;;  %v2961_v60 = vpop.permute.xlu0 %2960 }
 0xcc4   :  { %4579 = vmatpush3.xpose.msk.msra.mxu0 %vm297_vm2, %v2617_v59  ;;  %4580 = vmatprep.mubr.msk.f32.mxu0 %vm5014_vm1, %v5013_v36 }
 0xcc5   :  { %4588 = vmatprep.subr.mxu0 %v5013_v36 }
 0xcc7   :  { %v2796_v61 = vpop.permute.xlu1 %2795  ;;  %4581 = vmatmul.mubr.msk.f32.vlgmr.msra.gmra.mrb[24].mxu0 %vm297_vm2, %v2615_v58  ;;  %v3126_v63 = vpop.permute.xlu0 %3125 }
 0xcc8   :  { %4589 = vmatpush3.xpose.msk.msra.mxu0 %vm297_vm2, %v2796_v61  ;;  %4590 = vmatprep.mubr.msk.f32.mxu0 %vm5014_vm1, %v5013_v36 }
 0xcc9   :  { %4598 = vmatprep.subr.mxu0 %v5013_v36 }
 0xccb   :  { %v2959_v62 = vpop.permute.xlu1 %2958  ;;  %4591 = vmatmul.mubr.msk.f32.vlgmr.msra.gmra.mrb[26].mxu0 %vm297_vm2, %v5459_v52  ;;  %v3291_v1 = vpop.permute.xlu0 %3290 }
 0xccc   :  { %4599 = vmatpush3.xpose.msk.msra.mxu0 %vm297_vm2, %v2961_v60  ;;  %4600 = vmatprep.mubr.msk.f32.mxu0 %vm5014_vm1, %v5013_v36 }
 0xccd   :  { %4608 = vmatprep.subr.mxu0 %v5013_v36 }
 0xccf   :  { %4601 = vmatmul.mubr.msk.f32.vlgmr.msra.gmra.mrb[28].mxu0 %vm297_vm2, %v2959_v62  ;;  %v3124_v0 = vpop.permute.xlu1 %3123 }
 0xcd0   :  { %4609 = vmatpush3.xpose.msk.msra.mxu0 %vm297_vm2, %v3126_v63  ;;  %4610 = vmatprep.mubr.msk.f32.mxu0 %vm5014_vm1, %v5013_v36 }
 0xcd1   :  { %4618 = vmatprep.subr.mxu0 %v5013_v36 }
 0xcd3   :  { %4611 = vmatmul.mubr.msk.f32.vlgmr.msra.gmra.mrb[30].mxu0 %vm297_vm2, %v3124_v0  ;;  %v3289_v2 = vpop.permute.xlu1 %3288 }
 0xcd4   :  { %4619 = vmatpush3.xpose.msk.msra.mxu0 %vm297_vm2, %v3291_v1  ;;  %4620 = vmatprep.mubr.msk.f32.mxu0 %vm5014_vm1, %v5013_v36 }
 0xcd7   :  { %4621 = vmatmul.mubr.msk.f32.vlgmr.msra.gmra.mrb[32].mxu0 %vm297_vm2, %v3289_v2 }
 0xd8e   :  { %v2193_v3 = vpop.f32.mrb[22].mxu1 }
 0xd8f   :  { %v4552_v4 = vpop.f32.mrb[23].mxu1  ;;  %v2358_v5 = vpop.f32.mrb[20].mxu0  ;;  %v2197_v6 = vsel %vm297_vm2, %v2193_v3, -inf }
 0xd90   :  { %v4562_v41 = vpop.f32.mrb[21].mxu0  ;;  %2198 = vmax.xlane.f32.xlu0 %v2197_v6  ;;  %v2362_v7 = vsel %vm297_vm2, %v2358_v5, -inf }
 0xd91   :  { %2363 = vmax.xlane.f32.xlu1 %v2362_v7 }
 0xd96   :  { %v2523_v8 = vpop.f32.mrb[22].mxu0 }
 0xd97   :  { %v4572_v9 = vpop.f32.mrb[23].mxu0  ;;  %v2527_v10 = vsel %vm297_vm2, %v2523_v8, -inf }
 0xd98   :  { %2528 = vmax.xlane.f32.xlu0 %v2527_v10 }
 0xd9a   :  { %v2688_v11 = vpop.f32.mrb[24].mxu0 }
 0xd9b   :  { %v4582_v12 = vpop.f32.mrb[25].mxu0  ;;  %v2692_v13 = vsel %vm297_vm2, %v2688_v11, -inf }
 0xd9c   :  { %2693 = vmax.xlane.f32.xlu0 %v2692_v13 }
 0xd9e   :  { %v2867_v14 = vpop.f32.mrb[26].mxu0 }
 0xd9f   :  { %v4592_v15 = vpop.f32.mrb[27].mxu0  ;;  %v2871_v35 = vsel %vm297_vm2, %v2867_v14, -inf }
 0xda0   :  { %2872 = vmax.xlane.f32.xlu0 %v2871_v35 }
 0xda2   :  { %v3032_v33 = vpop.f32.mrb[28].mxu0 }
 0xda3   :  { %v4602_v16 = vpop.f32.mrb[29].mxu0  ;;  %v3036_v17 = vsel %vm297_vm2, %v3032_v33, -inf }
 0xda4   :  { %3037 = vmax.xlane.f32.xlu1 %v3036_v17 }
 0xda6   :  { %v3197_v18 = vpop.f32.mrb[30].mxu0 }
 0xda7   :  { %v4612_v19 = vpop.f32.mrb[31].mxu0  ;;  %v3201_v20 = vsel %vm297_vm2, %v3197_v18, -inf }
 0xda8   :  { %3202 = vmax.xlane.f32.xlu0 %v3201_v20 }
 0xdaa   :  { %v3362_v21 = vpop.f32.mrb[32].mxu0 }
 0xdab   :  { %v4622_v22 = vpop.f32.mrb[33].mxu0  ;;  %v3366_v23 = vsel %vm297_vm2, %v3362_v21, -inf }
 0xdb5   :  { %2208 = vrot.lane.b32.xlu1 %v5445_v51, %s5022_s23 }
 0xdd9   :  { %3367 = vmax.xlane.f32.xlu1 %v3366_v23 }
 0xdea   :  { %2538 = vrot.lane.b32.xlu1 %v5445_v51, %s5023_s26 }
 0xdee   :  { %2703 = vrot.lane.b32.xlu1 %v5445_v51, %s5024_s28 }
 0xdf2   :  { %2882 = vrot.lane.b32.xlu1 %v5459_v52, %s5022_s23 }
 0xe1d   :  { %v2199_v24 = vpop.xlane.xlu0 %2198 }
 0xe1e   :  { %v2200_v25 = vsub.f32 %v2193_v3, %v2199_v24  ;;  %v2364_v26 = vpop.xlane.xlu1 %2363 }
 0xe1f   :  { %v2365_v27 = vsub.f32 %v2358_v5, %v2364_v26 }
 0xe20   :  { %v2201_v28 = vmul.f32 1.442695, %v2200_v25 }
 0xe21   :  { %v2366_v29 = vmul.f32 1.442695, %v2365_v27 }
 0xe22   :  { %4914 = vpow2.f32 %v2201_v28 }
 0xe23   :  { %4916 = vpow2.f32 %v2366_v29 }
 0xe25   :  { %v2529_v30 = vpop.xlane.xlu0 %2528 }
 0xe26   :  { %v2530_v49 = vsub.f32 %v2523_v8, %v2529_v30 }
 0xe28   :  { %v2531_v50 = vmul.f32 1.442695, %v2530_v49 }
 0xe29   :  { %v2694_v31 = vpop.xlane.xlu0 %2693 }
 0xe2a   :  { %v2695_v32 = vsub.f32 %v2688_v11, %v2694_v31 }
 0xe2c   :  { %v4915_v34 = vpop.eup %4914  ;;  %v2696_v37 = vmul.f32 1.442695, %v2695_v32 }
 0xe2d   :  { %v5532_v38 = vpop.eup %4916  ;;  %v2203_v39 = vsel %vm297_vm2, %v4915_v34, 0.0  ;;  %v2873_v40 = vpop.xlane.xlu0 %2872 }
 0xe2e   :  { %4918 = vpow2.f32 %v2696_v37  ;;  %2204 = vadd.xlane.f32.xlu0 %v2203_v39  ;;  %v2368_v42 = vsel %vm297_vm2, %v5532_v38, 0.0  ;;  %v2874_v53 = vsub.f32 %v2867_v14, %v2873_v40 }
 0xe2f   :  { %2369 = vadd.xlane.f32.xlu1 %v2368_v42  ;;  %4920 = vpow2.f32 %v2531_v50  ;;  %v2012_v50 = vld [vmem:[%s5692_s8 + $0x10] sm:$0xff] }
 0xe30   :  { %v2875_v55 = vmul.f32 1.442695, %v2874_v53  ;;  %v2013_v53 = vld [vmem:[%s5692_s8 + $0x18] sm:$0xff] }
 0xe31   :  { %v3038_v43 = vpop.xlane.xlu1 %3037 }
 0xe32   :  { %4922 = vpow2.f32 %v2875_v55  ;;  %v3039_v57 = vsub.f32 %v3032_v33, %v3038_v43  ;;  %v4765_v55 = vpack.c.bf16 %v2013_v53, %v2012_v50 }
 0xe34   :  { %v3040_v59 = vmul.f32 1.442695, %v3039_v57 }
 0xe35   :  { %v2209_v44 = vpop.permute.xlu1 %2208  ;;  %v3203_v54 = vpop.xlane.xlu0 %3202 }
 0xe36   :  { %4554 = vmatpush3.msra.mxu1 %v2209_v44  ;;  %v3204_v56 = vsub.f32 %v3197_v18, %v3203_v54  ;;  %v2010_v44 = vld [vmem:[%s5692_s8] sm:$0xff] }
 0xe37   :  { %4563 = vmatprep.subr.mxu1 %v5013_v36 }
 0xe38   :  { %v5538_v45 = vpop.eup %4918  ;;  %v3205_v58 = vmul.f32 1.442695, %v3204_v56 }
 0xe39   :  { %v2698_v46 = vsel %vm297_vm2, %v5538_v45, 0.0  ;;  %v4921_v60 = vpop.eup %4920 }
 0xe3a   :  { %2699 = vadd.xlane.f32.xlu1 %v2698_v46  ;;  %4924 = vpow2.f32 %v3205_v58 }
 0xe3b   :  { %4926 = vpow2.f32 %v3040_v59 }
 0xe3c   :  { %v4923_v61 = vpop.eup %4922 }
 0xe3d   :  { %v2877_v63 = vsel %vm297_vm2, %v4923_v61, 0.0 }
 0xe44   :  { %2373 = vrot.lane.b32.xlu0 %v5445_v51, %s5025_s1  ;;  %v2533_v51 = vsel %vm297_vm2, %v4921_v60, 0.0  ;;  %v5548_v0 = vpop.eup %4924 }
 0xe45   :  { %v3207_v3 = vsel %vm297_vm2, %v5548_v0, 0.0  ;;  %v4927_v4 = vpop.eup %4926 }
 0xe46   :  { %v3042_v5 = vsel %vm297_vm2, %v4927_v4, 0.0 }
 0xe4b   :  { %3047 = vrot.lane.b32.xlu1 %v5459_v52, %s5025_s1 }
 0xe63   :  { %2534 = vadd.xlane.f32.xlu0 %v2533_v51 }
 0xe66   :  { %v3368_v62 = vpop.xlane.xlu1 %3367 }
 0xe67   :  { %v3369_v1 = vsub.f32 %v3362_v21, %v3368_v62  ;;  %2878 = vadd.xlane.f32.xlu0 %v2877_v63 }
 0xe69   :  { %v3370_v2 = vmul.f32 1.442695, %v3369_v1 }
 0xe6a   :  { %v2539_v7 = vpop.permute.xlu1 %2538 }
 0xe6b   :  { %4928 = vpow2.f32 %v3370_v2  ;;  %3208 = vadd.xlane.f32.xlu0 %v3207_v3 }
 0xe6e   :  { %v2704_v8 = vpop.permute.xlu1 %2703 }
 0xe6f   :  { %3043 = vadd.xlane.f32.xlu1 %v3042_v5 }
 0xe72   :  { %v2883_v9 = vpop.permute.xlu1 %2882 }
 0xe75   :  { %v5553_v6 = vpop.eup %4928 }
 0xe76   :  { %v3372_v41 = vsel %vm297_vm2, %v5553_v6, 0.0 }
 0xe77   :  { %3373 = vadd.xlane.f32.xlu0 %v3372_v41 }
 0xe80   :  { %3377 = vrot.lane.b32.xlu1 %v5459_v52, %s5024_s28 }
 0xe8d   :  { %3212 = vrot.lane.b32.xlu0 %v5459_v52, %s5023_s26 }
 0xebb   :  { %v2205_v10 = vpop.xlane.xlu0 %2204 }
 0xebc   :  { %4930 = vrcp.f32 %v2205_v10  ;;  %v2370_v11 = vpop.xlane.xlu1 %2369 }
 0xebd   :  { %4932 = vrcp.f32 %v2370_v11  ;;  %v4248_v11 = vld [vmem:[%s5693_s14] ss:$0 sm:$0xff] }
 0xebf   :  { %v2374_v15 = vpop.permute.xlu0 %2373 }
 0xec6   :  { %v4931_v12 = vpop.eup %4930 }
 0xec7   :  { %v2207_v13 = vmul.f32 %v4931_v12, %v4915_v34  ;;  %v4933_v14 = vpop.eup %4932  ;;  %v2700_v52 = vpop.xlane.xlu1 %2699 }
 0xec8   :  { %v2372_v35 = vmul.f32 %v4933_v14, %v5532_v38 }
 0xec9   :  { %4556 = vmatmul.mubr.msk.f32.vlgmr.msra.gmra.mrb[24].mxu1 %vm297_vm2, %v2207_v13 }
 0xeca   :  { %4564 = vmatpush3.msra.mxu1 %v2374_v15  ;;  %4565 = vmatprep.mubr.msk.f32.mxu1 %vm5014_vm1, %v5013_v36 }
 0xecb   :  { %4573 = vmatprep.subr.mxu1 %v5013_v36  ;;  %v3048_v17 = vpop.permute.xlu1 %3047 }
 0xecd   :  { %4566 = vmatmul.mubr.msk.f32.vlgmr.msra.gmra.mrb[26].mxu1 %vm297_vm2, %v2372_v35 }
 0xece   :  { %4574 = vmatpush3.msra.mxu1 %v2539_v7  ;;  %4575 = vmatprep.mubr.msk.f32.mxu1 %vm5014_vm1, %v5013_v36 }
 0xecf   :  { %4583 = vmatprep.subr.mxu1 %v5013_v36 }
 0xef0   :  { %v2535_v33 = vpop.xlane.xlu0 %2534 }
 0xef1   :  { %4934 = vrcp.f32 %v2535_v33 }
 0xef2   :  { %4936 = vrcp.f32 %v2700_v52 }
 0xef4   :  { %v2879_v16 = vpop.xlane.xlu0 %2878 }
 0xef5   :  { %4938 = vrcp.f32 %v2879_v16 }
 0xef8   :  { %v3209_v20 = vpop.xlane.xlu0 %3208 }
 0xefb   :  { %v4935_v18 = vpop.eup %4934 }
 0xefc   :  { %v2537_v19 = vmul.f32 %v4935_v18, %v4921_v60  ;;  %v3044_v21 = vpop.xlane.xlu1 %3043  ;;  %v4937_v22 = vpop.eup %4936 }
 0xefd   :  { %4940 = vrcp.f32 %v3044_v21  ;;  %v2702_v23 = vmul.f32 %v4937_v22, %v5538_v45  ;;  %v2011_v45 = vld [vmem:[%s5692_s8 + $0x8] sm:$0xff] }
 0xefe   :  { %4576 = vmatmul.mubr.msk.f32.vlgmr.msra.gmra.mrb[28].mxu1 %vm297_vm2, %v2537_v19  ;;  %4942 = vrcp.f32 %v3209_v20  ;;  %v4761_v49 = vpack.c.bf16 %v2011_v45, %v2010_v44  ;;  %v4252_v45 = vld [vmem:[%s5696_s30] ss:$0 sm:$0xff] }
 0xeff   :  { %4584 = vmatpush3.msra.mxu1 %v2704_v8  ;;  %4585 = vmatprep.mubr.msk.f32.mxu1 %vm5014_vm1, %v5013_v36  ;;  %v4939_v24 = vpop.eup %4938 }
 0xf00   :  { %4593 = vmatprep.subr.mxu1 %v5013_v36  ;;  %v2881_v25 = vmul.f32 %v4939_v24, %v4923_v61  ;;  %v3378_v32 = vpop.permute.xlu1 %3377  ;;  %4762 = vmatprep.subr.bf16.mxu0 %v4761_v49 }
 0xf01   :  { %4764 = vmatpush3.bf16.msra.mxu0 %v4761_v49 }
 0xf02   :  { %4586 = vmatmul.mubr.msk.f32.vlgmr.msra.gmra.mrb[30].mxu1 %vm297_vm2, %v2702_v23  ;;  %4766 = vmatprep.subr.bf16.mxu0 %v4765_v55 }
 0xf03   :  { %4594 = vmatpush3.msra.mxu1 %v2883_v9  ;;  %4595 = vmatprep.mubr.msk.f32.mxu1 %vm5014_vm1, %v5013_v36 }
 0xf04   :  { %v3374_v26 = vpop.xlane.xlu0 %3373  ;;  %4603 = vmatprep.subr.mxu1 %v5013_v36 }
 0xf05   :  { %4944 = vrcp.f32 %v3374_v26  ;;  %4768 = vmatpush3.bf16.msra.mxu0 %v4765_v55  ;;  %v2018_v26 = vld [vmem:[%s5694_s19 + $0x8] sm:$0xff]  ;;  %v2022_v55 = vld [vmem:[%s5697_s20] sm:$0xff] }
 0xf06   :  { %4596 = vmatmul.mubr.msk.f32.vlgmr.msra.gmra.mrb[32].mxu1 %vm297_vm2, %v2881_v25  ;;  %v2017_v25 = vld [vmem:[%s5694_s19] sm:$0xff] }
 0xf07   :  { %v4941_v27 = vpop.eup %4940  ;;  %4604 = vmatpush3.msra.mxu1 %v3048_v17  ;;  %4605 = vmatprep.mubr.msk.f32.mxu1 %vm5014_vm1, %v5013_v36 }
 0xf08   :  { %v3046_v28 = vmul.f32 %v4941_v27, %v4927_v4  ;;  %v3213_v29 = vpop.permute.xlu0 %3212  ;;  %4613 = vmatprep.subr.mxu1 %v5013_v36  ;;  %v4943_v30 = vpop.eup %4942  ;;  %v4769_v27 = vpack.c.bf16 %v2018_v26, %v2017_v25 }
 0xf09   :  { %v3211_v31 = vmul.f32 %v4943_v30, %v5548_v0 }
 0xf0a   :  { %4606 = vmatmul.mubr.msk.f32.vlgmr.msra.gmra.mrb[34].mxu1 %vm297_vm2, %v3046_v28  ;;  %v2019_v28 = vld [vmem:[%s5694_s19 + $0x10] sm:$0xff] }
 0xf0b   :  { %4614 = vmatpush3.msra.mxu1 %v3213_v29  ;;  %4615 = vmatprep.mubr.msk.f32.mxu1 %vm5014_vm1, %v5013_v36  ;;  %v2020_v29 = vld [vmem:[%s5694_s19 + $0x18] sm:$0xff] }
 0xf0c   :  { %4623 = vmatprep.subr.mxu1 %v5013_v36  ;;  %v4773_v30 = vpack.c.bf16 %v2020_v29, %v2019_v28 }
 0xf0e   :  { %4616 = vmatmul.mubr.msk.f32.vlgmr.msra.gmra.mrb[36].mxu1 %vm297_vm2, %v3211_v31 }
 0xf0f   :  { %v4945_v34 = vpop.eup %4944  ;;  %4624 = vmatpush3.msra.mxu1 %v3378_v32  ;;  %4625 = vmatprep.mubr.msk.f32.mxu1 %vm5014_vm1, %v5013_v36 }
 0xf10   :  { %v3376_v37 = vmul.f32 %v4945_v34, %v5553_v6  ;;  %4770 = vmatprep.subr.bf16.mxu1 %v4769_v27 }
 0xf12   :  { %4626 = vmatmul.mubr.msk.f32.vlgmr.msra.gmra.mrb[38].mxu1 %vm297_vm2, %v3376_v37 }
 0xf13   :  { %4772 = vmatpush3.bf16.msra.mxu1 %v4769_v27 }
 0xf14   :  { %4774 = vmatprep.subr.bf16.mxu1 %v4773_v30 }
 0xf17   :  { %4776 = vmatpush3.bf16.msra.mxu1 %v4773_v30  ;;  %v3827_v30 = vld [vmem:[%s5700_s16] sm:$0xff] }
 0xf9c   :  { %v2280_v38 = vpop.f32.mrb[24].mxu1 }
 0xf9d   :  { %v4557_v39 = vpop.f32.mrb[25].mxu1 }
 0xfa0   :  { %v2445_v42 = vpop.f32.mrb[26].mxu1 }
 0xfa1   :  { %2780 = vrot.lane.b32.xlu0 %v2445_v42, %s5026_s2  ;;  %v4567_v43 = vpop.f32.mrb[27].mxu1 }
 0xfa2   :  { %v4251_v43 = vld [vmem:[%s5695_s24] ss:$0 sm:$0xff] }
 0xfd1   :  { %v2610_v46 = vpop.f32.mrb[28].mxu1 }
 0xfd2   :  { %2784 = vrot.lane.b32.xlu1 %v2610_v46, %s5027_s7  ;;  %v4577_v40 = vpop.f32.mrb[29].mxu1 }
 0xfd5   :  { %v2775_v54 = vpop.f32.mrb[30].mxu1 }
 0xfd6   :  { %2788 = vrot.lane.b32.xlu1 %v2775_v54, %s5028_s10  ;;  %v4587_v56 = vpop.f32.mrb[31].mxu1 }
 0xfd7   :  { %v2023_v56 = vld [vmem:[%s5697_s20 + $0x8] sm:$0xff] }
 0xfd9   :  { %v2954_v57 = vpop.f32.mrb[32].mxu1 }
 0xfda   :  { %v4597_v58 = vpop.f32.mrb[33].mxu1 }
 0xfdb   :  { %v2024_v58 = vld [vmem:[%s5697_s20 + $0x10] sm:$0xff] }
 0xfdd   :  { %v3119_v59 = vpop.f32.mrb[34].mxu1 }
 0xfde   :  { %3454 = vrot.lane.b32.xlu0 %v3119_v59, %s5026_s2  ;;  %v4607_v60 = vpop.f32.mrb[35].mxu1  ;;  %v2025_v59 = vld [vmem:[%s5697_s20 + $0x18] sm:$0xff] }
 0xfdf   :  { %v4781_v60 = vpack.c.bf16 %v2025_v59, %v2024_v58  ;;  %v3833_v58 = vld [vmem:[%s5184_s4 + $0x8] sm:$0xff] }
 0xfe1   :  { %v3284_v51 = vpop.f32.mrb[36].mxu1 }
 0xfe2   :  { %3458 = vrot.lane.b32.xlu0 %v3284_v51, %s5027_s7  ;;  %v4617_v61 = vpop.f32.mrb[37].mxu1  ;;  %v2026_v51 = vld [vmem:[%s5697_s20 + $0x20] sm:$0xff] }
 0xfe3   :  { %v2027_v61 = vld [vmem:[%s5697_s20 + $0x28] sm:$0xff] }
 0xfe5   :  { %v3449_v62 = vpop.f32.mrb[38].mxu1 }
 0xfe6   :  { %3462 = vrot.lane.b32.xlu1 %v3449_v62, %s5028_s10  ;;  %v4627_v63 = vpop.f32.mrb[39].mxu1  ;;  %v4785_v62 = vpack.c.bf16 %v2027_v61, %v2026_v51 }
 0xfe7   :  { %v2028_v63 = vld [vmem:[%s5697_s20 + $0x30] sm:$0xff] }
0x1013   :  { %v2781_v0 = vpop.permute.xlu0 %2780 }
0x1014   :  { %v2791_v2 = vsel %vm297_vm2, %v2280_v38, %v2781_v0  ;;  %v2029_v0 = vld [vmem:[%s5697_s20 + $0x38] sm:$0xff] }
0x1044   :  { %v2785_v1 = vpop.permute.xlu1 %2784 }
0x1045   :  { %v2792_v3 = vsel %vm967_vm3, %v2791_v2, %v2785_v1  ;;  %v4789_v1 = vpack.c.bf16 %v2029_v0, %v2028_v63  ;;  %v4253_v2 = vld [vmem:[%s5698_s11] ss:$0 sm:$0xff]  ;;  %v3834_v63 = vld [vmem:[%s5184_s4 + $0x10] sm:$0xff]  ;;  %v3835_v0 = vld [vmem:[%s5184_s4 + $0x18] sm:$0xff] }
0x1048   :  { %v2789_v4 = vpop.permute.xlu1 %2788 }
0x1049   :  { %v2793_v5 = vsel %vm969_vm4, %v2792_v3, %v2789_v4 }
0x104a   :  { %4636 = vmatprep.mubr.msk.f32.mxu0 %vm135_vm0, %v2793_v5 }
0x1050   :  { %v3455_v6 = vpop.permute.xlu0 %3454 }
0x1051   :  { %v3465_v7 = vsel %vm297_vm2, %v2954_v57, %v3455_v6  ;;  %v4777_v57 = vpack.c.bf16 %v2023_v56, %v2022_v55  ;;  %v4260_v56 = vld [vmem:[%s5702_s0] ss:$0 sm:$0xff] }
0x1053   :  { %4778 = vmatprep.subr.bf16.mxu0 %v4777_v57 }
0x1054   :  { %v3459_v41 = vpop.permute.xlu0 %3458 }
0x1055   :  { %v3466_v8 = vsel %vm967_vm3, %v3465_v7, %v3459_v41 }
0x1058   :  { %v3463_v9 = vpop.permute.xlu1 %3462 }
0x1059   :  { %v3467_v10 = vsel %vm969_vm4, %v3466_v8, %v3463_v9 }
0x105a   :  { %4637 = vmatmul.mubr.msk.f32.vlgmr.msra.gmra.mrb[34].mxu0 %vm135_vm0, %v3467_v10 }
0x105b   :  { %4780 = vmatpush3.bf16.msra.mxu0 %v4777_v57  ;;  %v3832_v57 = vld [vmem:[%s5184_s4] sm:$0xff] }
0x105c   :  { %4782 = vmatprep.subr.bf16.mxu0 %v4781_v60  ;;  %v4800_v61 = vpack.c.bf16 %v3833_v58, %v3832_v57 }
0x105f   :  { %4784 = vmatpush3.bf16.msra.mxu0 %v4781_v60 }
0x1060   :  { %4786 = vmatprep.subr.bf16.mxu0 %v4785_v62 }
0x1063   :  { %4788 = vmatpush3.bf16.msra.mxu0 %v4785_v62 }
0x1064   :  { %4790 = vmatprep.subr.bf16.mxu0 %v4789_v1 }
0x1067   :  { %4792 = vmatpush3.bf16.msra.mxu0 %v4789_v1  ;;  %v4803_v1 = vpack.c.bf16 %v3835_v0, %v3834_v63 }
0x112d   :  { %v4638_v12 = vpop.f32.mrb[34].mxu0 }
0x112e   :  { %v3552_v13 = vadd.f32 %v4638_v12, %v4248_v11  ;;  %v3546_v14 = vpop.f32.mrb[35].mxu0 }
0x112f   :  { %v3547_v15 = vadd.f32 %v4248_v11, %v3546_v14 }
0x1130   :  { %v3556_v35 = vadd.f32 %v3552_v13, %v5436_v48 }
0x1131   :  { %v3555_v52 = vadd.f32 %v3547_v15, %v5434_v47 }
0x1132   :  { %v3560_v33 = vsel %vm135_vm0, %v3556_v35, 0.0 }
0x1133   :  { %3561 = vadd.xlane.f32.xlu1 %v3560_v33  ;;  %v3557_v16 = vsel %vm135_vm0, %v3555_v52, 0.0 }
0x1134   :  { %3558 = vadd.xlane.f32.xlu0 %v3557_v16 }
0x11c0   :  { %v3562_v17 = vpop.xlane.xlu1 %3561 }
0x11c1   :  { %v3564_v18 = vmul.f32 0.03125, %v3562_v17  ;;  %v3559_v19 = vpop.xlane.xlu0 %3558 }
0x11c2   :  { %v3563_v20 = vmul.f32 0.03125, %v3559_v19 }
0x11c3   :  { %v3566_v21 = vsub.f32 %v3556_v35, %v3564_v18  ;;  %v4256_v35 = vld [vmem:[%s5699_s15] ss:$0 sm:$0xff] }
0x11c4   :  { %v3565_v22 = vsub.f32 %v3555_v52, %v3563_v20 }
0x11c5   :  { %v3568_v47 = vmul.f32 %v3566_v21, %v3566_v21 }
0x11c6   :  { %v3567_v23 = vmul.f32 %v3565_v22, %v3565_v22 }
0x11c7   :  { %v3572_v24 = vsel %vm135_vm0, %v3568_v47, 0.0 }
0x11c8   :  { %v3569_v48 = vsel %vm135_vm0, %v3567_v23, 0.0 }
0x11c9   :  { %3570 = vadd.xlane.f32.xlu0 %v3569_v48 }
0x11cd   :  { %3573 = vadd.xlane.f32.xlu0 %v3572_v24 }
0x1256   :  { %v3571_v31 = vpop.xlane.xlu0 %3570 }
0x1257   :  { %v3575_v32 = vmul.f32 0.03125, %v3571_v31  ;;  %v3828_v31 = vld [vmem:[%s5700_s16 + $0x8] sm:$0xff] }
0x1259   :  { %v3577_v34 = vadd.f32 1e-12, %v3575_v32  ;;  %v4794_v32 = vpack.c.bf16 %v3828_v31, %v3827_v30 }
0x125a   :  { %v3574_v37 = vpop.xlane.xlu0 %3573 }
0x125b   :  { %4946 = vrsqrt.f32 %v3577_v34  ;;  %v3576_v38 = vmul.f32 0.03125, %v3574_v37  ;;  %v5029_v34 = vmov 0.0|0.0   ;;  %v3829_v37 = vld [vmem:[%s5700_s16 + $0x10] sm:$0xff] }
0x125c   :  { %4805 = vmatprep.subr.bf16.mxu0 %v5029_v34  ;;  %4793 = vmatprep.subr.bf16.mxu1 %v5029_v34 }
0x125d   :  { %v3578_v39 = vadd.f32 1e-12, %v3576_v38  ;;  %v3830_v38 = vld [vmem:[%s5700_s16 + $0x18] sm:$0xff] }
0x125f   :  { %4948 = vrsqrt.f32 %v3578_v39  ;;  %v4797_v39 = vpack.c.bf16 %v3830_v38, %v3829_v37 }
0x1265   :  { %v4947_v42 = vpop.eup %4946 }
0x1266   :  { %v3581_v44 = vmul.f32 %v4947_v42, %v3565_v22 }
0x1268   :  { %v3589_v46 = vmul.f32 %v4251_v43, %v3581_v44 }
0x1269   :  { %v4949_v49 = vpop.eup %4948 }
0x126a   :  { %v3582_v40 = vmul.f32 %v4949_v49, %v3566_v21  ;;  %v3597_v50 = vadd.f32 %v4252_v45, %v3589_v46 }
0x126c   :  { %v3590_v53 = vmul.f32 %v4251_v43, %v3582_v40  ;;  %4647 = vmatprep.mubr.msk.f32.mxu1 %vm135_vm0, %v3597_v50 }
0x126e   :  { %v3598_v54 = vadd.f32 %v4252_v45, %v3590_v53 }
0x1270   :  { %4648 = vmatmul.mubr.msk.f32.vlgmr.msra.gmra.mrb[40].mxu1 %vm135_vm0, %v3598_v54 }
0x1271   :  { %4677 = vmatprep.mubr.msk.f32.mxu1 %vm5014_vm1, %v5013_v36  ;;  %4795 = vmatpush3.bf16.msra.mxu1 %v4794_v32 }
0x1272   :  { %4796 = vmatprep.subr.bf16.mxu1 %v5029_v34 }
0x1275   :  { %4798 = vmatpush3.bf16.msra.mxu1 %v4797_v39 }
0x1276   :  { %4799 = vmatprep.subr.bf16.mxu1 %v5029_v34 }
0x1343   :  { %v4649_v3 = vpop.f32.mrb[40].mxu1 }
0x1344   :  { %v3683_v4 = vadd.f32 %v4649_v3, %v4253_v2  ;;  %v3677_v5 = vpop.f32.mrb[41].mxu1 }
0x1345   :  { %v3678_v6 = vadd.f32 %v4253_v2, %v3677_v5  ;;  %v3831_v2 = vld [vmem:[%s5179_s27] sm:$0x1]  ;;  %s5030_s27 = smov [#allocation2]  }
0x1346   :  { %v3689_v41 = vmul.f32 0.70710677, %v3683_v4  ;;  %v3687_v13 = vmul.f32 0.5, %v3683_v4  ;;  %s4140_s4 = sshll.u32 %s5030_s27, 4  ;;  %s4141_s4 = int_to_ptr.vmem [resolvable:$true] %s4140_s4 }
0x1347   :  { %v3688_v7 = vmul.f32 0.70710677, %v3678_v6  ;;  %v3686_v11 = vmul.f32 0.5, %v3678_v6  ;;  %s4958_s5 = scalar_lea.vmem %s4141_s4, 32  ;;  %p4963_p1 = scmp.lt.s32.totalorder %s4141_s4, %s4141_s4 }
0x1348   :  { %4950 = verf.f32 %v3689_v41  ;;  %p4959_p0 = scmp.ne.s32.totalorder %s4141_s4, %s4958_s5  ;;  %p4964_p2 = scmp.lt.s32.totalorder %s4958_s5, %s4958_s5 }
0x1349   :  { %4952 = verf.f32 %v3688_v7 }
0x134a   :  { %p4965_p3 = por %p4964_p2, %p4963_p1 }
0x134c   :  { %p4966_p4 = pnand %p4965_p3, %p4959_p0 }
0x1352   :  { %v4951_v8 = vpop.eup %4950 }
0x1353   :  { %v4953_v9 = vpop.eup %4952  ;;  %v3693_v10 = vadd.f32 1.0, %v4951_v8 }
0x1354   :  { %v3692_v12 = vadd.f32 1.0, %v4953_v9 }
0x1355   :  { %v3695_v15 = vmul.f32 %v3693_v10, %v3687_v13  ;;  %v3836_v10 = vld [vmem:[%s5189_s12] sm:$0x1] }
0x1356   :  { %v3694_v14 = vmul.f32 %v3692_v12, %v3686_v11 }
0x1358   :  { %4666 = vmatprep.mubr.msk.f32.mxu0 %vm1879_vm5, %v3694_v14 }
0x1359   :  { %4667 = vmatmul.mubr.msk.f32.vlgmr.msra.gmra.mrb[36].mxu0 %vm1879_vm5, %v3695_v15 }
0x135a   :  { %4699 = vmatprep.mubr.msk.f32.mxu0 %vm5014_vm1, %v5013_v36  ;;  %4807 = vmatpush3.bf16.msra.mxu0 %v4794_v32 }
0x135b   :  { %4808 = vmatprep.subr.bf16.mxu0 %v5029_v34 }
0x135e   :  { %4810 = vmatpush3.bf16.msra.mxu0 %v4797_v39 }
0x142c   :  { %v4668_v52 = vpop.f32.mrb[36].mxu0 }
0x142d   :  { %v3780_v33 = vadd.f32 %v4668_v52, %v4256_v35  ;;  %v3774_v16 = vpop.f32.mrb[37].mxu0 }
0x142e   :  { %v3775_v17 = vadd.f32 %v4256_v35, %v3774_v16 }
0x142f   :  { %v3784_v18 = vadd.f32 %v3780_v33, %v3598_v54 }
0x1430   :  { %v3783_v19 = vadd.f32 %v3775_v17, %v3597_v50  ;;  %v4259_v50 = vld [vmem:[%s5701_s18] ss:$0 sm:$0xff] }
0x1431   :  { %v3788_v20 = vsel %vm135_vm0, %v3784_v18, 0.0 }
0x1432   :  { %3789 = vadd.xlane.f32.xlu1 %v3788_v20  ;;  %v3785_v21 = vsel %vm135_vm0, %v3783_v19, 0.0 }
0x1433   :  { %3786 = vadd.xlane.f32.xlu0 %v3785_v21 }
0x14bf   :  { %v3790_v22 = vpop.xlane.xlu1 %3789 }
0x14c0   :  { %v3792_v23 = vmul.f32 0.03125, %v3790_v22  ;;  %v3787_v48 = vpop.xlane.xlu0 %3786 }
0x14c1   :  { %v3791_v47 = vmul.f32 0.03125, %v3787_v48 }
0x14c2   :  { %v3794_v24 = vsub.f32 %v3784_v18, %v3792_v23 }
0x14c3   :  { %v3793_v25 = vsub.f32 %v3783_v19, %v3791_v47 }
0x14c4   :  { %v3796_v26 = vmul.f32 %v3794_v24, %v3794_v24 }
0x14c5   :  { %v3795_v27 = vmul.f32 %v3793_v25, %v3793_v25 }
0x14c6   :  { %v3800_v28 = vsel %vm135_vm0, %v3796_v26, 0.0 }
0x14c7   :  { %3801 = vadd.xlane.f32.xlu1 %v3800_v28  ;;  %v3797_v29 = vsel %vm135_vm0, %v3795_v27, 0.0 }
0x14c8   :  { %3798 = vadd.xlane.f32.xlu0 %v3797_v29 }
0x1554   :  { %v3802_v42 = vpop.xlane.xlu1 %3801 }
0x1555   :  { %v3804_v43 = vmul.f32 0.03125, %v3802_v42  ;;  %v3799_v44 = vpop.xlane.xlu0 %3798 }
0x1556   :  { %v3803_v45 = vmul.f32 0.03125, %v3799_v44 }
0x1557   :  { %v3806_v46 = vadd.f32 1e-12, %v3804_v43 }
0x1558   :  { %v3805_v49 = vadd.f32 1e-12, %v3803_v45 }
0x1559   :  { %4954 = vrsqrt.f32 %v3806_v46 }
0x155a   :  { %4956 = vrsqrt.f32 %v3805_v49 }
0x1563   :  { %v4955_v40 = vpop.eup %4954 }
0x1564   :  { %v4957_v53 = vpop.eup %4956  ;;  %v3810_v54 = vmul.f32 %v4955_v40, %v3794_v24 }
0x1565   :  { %v3809_v55 = vmul.f32 %v4957_v53, %v3793_v25 }
0x1566   :  { %v3818_v59 = vmul.f32 %v4259_v50, %v3810_v54 }
0x1567   :  { %v3817_v60 = vmul.f32 %v4259_v50, %v3809_v55 }
0x1568   :  { %v3826_v51 = vadd.f32 %v4260_v56, %v3818_v59 }
0x1569   :  { %v3825_v62 = vadd.f32 %v4260_v56, %v3817_v60 }
0x156a   :  { %4700 = vmatmul.mubr.msk.f32.vlgmr.msra.gmra.mrb[38].mxu0 %vm135_vm0, %v3826_v51 }
0x156b   :  { %4678 = vmatmul.mubr.msk.f32.vlgmr.msra.gmra.mrb[42].mxu1 %vm135_vm0, %v3825_v62 }
0x156c   :  { %4801 = vmatpush3.bf16.msra.mxu1 %v4800_v61  ;;  %4688 = vmatprep.mubr.msk.f32.mxu1 %vm5014_vm1, %v5013_v36 }
0x156d   :  { %4802 = vmatprep.subr.bf16.mxu1 %v5029_v34 }
0x1570   :  { %4804 = vmatpush3.bf16.msra.mxu1 %v4803_v1 }
0x1571   :  { %4811 = vmatprep.subr.bf16.mxu1 %v5029_v34 }
0x163d   :  { %v4055_v3 = vpop.f32.mrb[38].mxu0 }
0x163e   :  { %v3906_v4 = vpop.f32.mrb[42].mxu1  ;;  %v4701_v5 = vpop.f32.mrb[39].mxu0  ;;  %v4056_v8 = vadd.f32 %v4055_v3, %v3831_v2 }
0x163f   :  { %v3907_v6 = vadd.f32 %v3906_v4, %v3831_v2  ;;  %v4679_v41 = vpop.f32.mrb[43].mxu1 }
0x1640   :  { %v4059_v9 = vmax.f32 %v4056_v8, 0.0 }
0x1641   :  { %v3910_v7 = vmax.f32 %v3907_v6, 0.0 }
0x1643   :  { %4689 = vmatmul.mubr.msk.f32.vlgmr.msra.gmra.mrb[44].mxu1 %vm135_vm0, %v3910_v7 }
0x1644   :  { %4813 = vmatpush3.bf16.msra.mxu1 %v4800_v61  ;;  %4710 = vmatprep.mubr.msk.f32.mxu1 %vm5014_vm1, %v5013_v36 }
0x1645   :  { %4814 = vmatprep.subr.bf16.mxu1 %v5029_v34 }
0x1648   :  { %4816 = vmatpush3.bf16.msra.mxu1 %v4803_v1 }
0x164b   :  { %4711 = vmatmul.mubr.msk.f32.vlgmr.msra.gmra.mrb[46].mxu1 %vm135_vm0, %v4059_v9 }
0x1716   :  { %v3980_v11 = vpop.f32.mrb[44].mxu1 }
0x1717   :  { %v3981_v12 = vadd.f32 %v3980_v11, %v3836_v10  ;;  %v4690_v13 = vpop.f32.mrb[45].mxu1 }
0x1719   :  { %3985 = vst.msk [vmem:[#allocation2] sm:$0x1] %vm3984_vm6, %v3981_v12 }
0x171e   :  { %v4129_v14 = vpop.f32.mrb[46].mxu1 }
0x171f   :  { %v4130_v15 = vadd.f32 %v4129_v14, %v3836_v10  ;;  %v4712_v35 = vpop.f32.mrb[47].mxu1 }
0x1721   :  { %4133 = vst.msk [vmem:[#allocation2 + $0x1] sm:$0x1] %vm3984_vm6, %v4130_v15 }
0x1722   :  { %4969 = shalt.err (!%p4966_p4)
}
0x1723   :  { %s4970_s12 = scalar_lea.hbm %s5194_s6, 32 }
0x1724   :  { %p4971_p5 = scmp.ne.s32.totalorder %s5194_s6, %s4970_s12  ;;  %p4974_p6 = scmp.lt.u32.totalorder %s4970_s12, %s5194_s6 }
0x1726   :  { %p4976_p7 = pnand %p4974_p6, %p4971_p5 }
0x1728   :  { %4979 = shalt.err (!%p4976_p7)
}
0x1729   :  { %4143 = dma.vmem_to_hbm [thread:$0]  %s4141_s4, 32, %s5194_s6, [#allocation3]  }
0x172a   :  { %4980 = dma.done.wait [#allocation3], 32  }
0x172b   :  { %4981 = vsyncadd [#allocation3], 4294967264 }
0x172c   :  { %4147 = vsyncpa [#allocation3], 1 }

</bundles_post_ra>
